<compile_context>
chip_gen: v6e
topology: v6e:2x2x1
jax: 0.10.0
libtpu: 0.0.40
codegen_flags: <defaults>
</compile_context>

<pallas_src>
import functools
import math

import jax
import jax.numpy as jnp
from jax.experimental import pallas as pl
from jax.experimental.pallas import tpu as pltpu

F32 = jnp.float32
BF16 = jnp.bfloat16
_MB = 1024 * 1024


def _round_up(x, m):
    return -(-x // m) * m


def _row_tile(bytes_per_row, target=2 * _MB, lo=8, hi=2048):
    t = max(lo, min(hi, target // max(int(bytes_per_row), 1)))
    return _round_up(t, 8)


def _full_spec(shape):
    return pl.BlockSpec(shape, lambda: (0,) * len(shape))


# -----------------------------------------------------------------------------
# dense  (row-tiled matmul, optional PReLU, selectable out dtype)
# -----------------------------------------------------------------------------
def _dense_kernel(x_ref, w_ref, b_ref, o_ref, *, cd):
    y = jnp.dot(x_ref[...].astype(cd), w_ref[...],
                preferred_element_type=jnp.float32) + b_ref[...]
    o_ref[...] = y.astype(o_ref.dtype)


def _dense_prelu_kernel(x_ref, w_ref, b_ref, a_ref, o_ref, *, cd):
    y = jnp.dot(x_ref[...].astype(cd), w_ref[...],
                preferred_element_type=jnp.float32) + b_ref[...]
    o_ref[...] = jnp.where(y >= 0.0, y, a_ref[...] * y).astype(o_ref.dtype)


def dense(x, w, b=None, alpha=None, *, act=None, out_dtype=F32,
          compute_dtype=BF16, tile_m=None):
    """act(x @ w + b). MXU operands cast to compute_dtype inside the kernel,
    f32 accumulation, optional per-column PReLU slope, tiled over rows."""
    M, K = x.shape
    N = w.shape[1]
    b2 = (jnp.zeros((N,), F32) if b is None else jnp.asarray(b, F32)).reshape(1, N)
    wc = jnp.asarray(w, compute_dtype)

    if tile_m is None:
        bpr = K * x.dtype.itemsize + N * jnp.dtype(out_dtype).itemsize + 4 * N
        tile_m = _row_tile(bpr)
    if M <= tile_m:
        tm, Mp, xp = M, M, x
    else:
        tm = tile_m
        Mp = _round_up(M, tm)
        xp = jnp.pad(x, ((0, Mp - M), (0, 0))) if Mp != M else x

    ins = [xp, wc, b2]
    specs = [pl.BlockSpec((tm, K), lambda i: (i, 0)),
             pl.BlockSpec((K, N), lambda i: (0, 0)),
             pl.BlockSpec((1, N), lambda i: (0, 0))]
    if act is None:
        kern = functools.partial(_dense_kernel, cd=compute_dtype)
    elif act == "prelu":
        a2 = jnp.broadcast_to(jnp.asarray(alpha, F32).reshape(-1), (N,)).reshape(1, N)
        ins.append(a2)
        specs.append(pl.BlockSpec((1, N), lambda i: (0, 0)))
        kern = functools.partial(_dense_prelu_kernel, cd=compute_dtype)
    else:
        raise ValueError(act)

    out = pl.pallas_call(
        kern,
        out_shape=jax.ShapeDtypeStruct((Mp, N), out_dtype),
        grid=(Mp // tm,),
        in_specs=specs,
        out_specs=pl.BlockSpec((tm, N), lambda i: (i, 0)),
        compiler_params=pltpu.CompilerParams(dimension_semantics=("parallel",)),
    )(*ins)
    return out[:M] if Mp != M else out


def _dense_dual_kernel(a_ref, b_ref, w1_ref, w2_ref, o_ref, *, cd):
    y = jnp.dot(a_ref[...].astype(cd), w1_ref[...], preferred_element_type=jnp.float32)
    y = y + jnp.dot(b_ref[...].astype(cd), w2_ref[...], preferred_element_type=jnp.float32)
    o_ref[...] = y.astype(o_ref.dtype)


def dense_dual(a, b, w1, w2, *, out_dtype=F32, compute_dtype=BF16):
    """a @ w1 + b @ w2 fused (avoids concatenating a and b in HBM)."""
    M, K = a.shape
    N = w1.shape[1]
    bpr = 2 * K * a.dtype.itemsize + N * jnp.dtype(out_dtype).itemsize
    tile_m = _row_tile(bpr)
    if M <= tile_m:
        tm, Mp, ap, bp = M, M, a, b
    else:
        tm = tile_m
        Mp = _round_up(M, tm)
        pad = ((0, Mp - M), (0, 0))
        ap = jnp.pad(a, pad) if Mp != M else a
        bp = jnp.pad(b, pad) if Mp != M else b
    out = pl.pallas_call(
        functools.partial(_dense_dual_kernel, cd=compute_dtype),
        out_shape=jax.ShapeDtypeStruct((Mp, N), out_dtype),
        grid=(Mp // tm,),
        in_specs=[pl.BlockSpec((tm, K), lambda i: (i, 0)),
                  pl.BlockSpec((tm, K), lambda i: (i, 0)),
                  pl.BlockSpec((K, N), lambda i: (0, 0)),
                  pl.BlockSpec((K, N), lambda i: (0, 0))],
        out_specs=pl.BlockSpec((tm, N), lambda i: (i, 0)),
        compiler_params=pltpu.CompilerParams(dimension_semantics=("parallel",)),
    )(ap, bp, jnp.asarray(w1, compute_dtype), jnp.asarray(w2, compute_dtype))
    return out[:M] if Mp != M else out


# -----------------------------------------------------------------------------
# LayerNorm family
# -----------------------------------------------------------------------------
def _ln_kernel(x_ref, g_ref, b_ref, o_ref):
    x = x_ref[...].astype(jnp.float32)
    mu = jnp.mean(x, axis=-1, keepdims=True)
    var = jnp.mean((x - mu) ** 2, axis=-1, keepdims=True)
    y = (x - mu) * jax.lax.rsqrt(var + 1e-5) * g_ref[...] + b_ref[...]
    o_ref[...] = y.astype(o_ref.dtype)


def layer_norm(x2d, gamma, beta, *, out_dtype=F32, tile_n=None):
    N, D = x2d.shape
    if tile_n is None:
        bpr = D * (x2d.dtype.itemsize + jnp.dtype(out_dtype).itemsize)
        tile_n = _row_tile(bpr, target=3 * _MB, hi=8192)
    if N <= tile_n:
        tn, Np, xp = N, N, x2d
    else:
        tn = tile_n
        Np = _round_up(N, tn)
        xp = jnp.pad(x2d, ((0, Np - N), (0, 0))) if Np != N else x2d
    out = pl.pallas_call(
        _ln_kernel,
        out_shape=jax.ShapeDtypeStruct((Np, D), out_dtype),
        grid=(Np // tn,),
        in_specs=[pl.BlockSpec((tn, D), lambda i: (i, 0)),
                  pl.BlockSpec((1, D), lambda i: (0, 0)),
                  pl.BlockSpec((1, D), lambda i: (0, 0))],
        out_specs=pl.BlockSpec((tn, D), lambda i: (i, 0)),
        compiler_params=pltpu.CompilerParams(dimension_semantics=("parallel",)),
    )(xp, jnp.asarray(gamma, F32).reshape(1, D), jnp.asarray(beta, F32).reshape(1, D))
    return out[:N] if Np != N else out


def channel_ln(x, gamma, beta, *, out_dtype=F32):
    """LayerNormalization4D: normalize over C (last axis, channels-last)."""
    # TODO(synk): C (= emb_dim) is not a multiple of 128 so stores are
    # lane-masked; acceptable since all transposes around it were removed.
    shp = x.shape
    return layer_norm(x.reshape(-1, shp[-1]), gamma, beta,
                      out_dtype=out_dtype).reshape(shp)


def cf_ln(x, gamma, beta, *, out_dtype=F32):
    """LayerNormalization4DCF: normalize jointly over (F, C) per (b, t)."""
    B, T, Fq, Cx = x.shape
    y = layer_norm(x.reshape(B * T, Fq * Cx), gamma, beta, out_dtype=out_dtype)
    return y.reshape(B, T, Fq, Cx)


def group_norm1(x, gamma, beta):
    """GroupNorm(1, C): stats over (T, F, C) per batch; per-channel affine."""
    B, T, Fq, C = x.shape
    g = jnp.broadcast_to(gamma[None, :], (T * Fq, C)).reshape(-1)
    bt = jnp.broadcast_to(beta[None, :], (T * Fq, C)).reshape(-1)
    return layer_norm(x.reshape(B, T * Fq * C), g, bt).reshape(B, T, Fq, C)


# -----------------------------------------------------------------------------
# Multi-head attention (query-tiled)
# -----------------------------------------------------------------------------
def _attn_kernel(q_ref, k_ref, v_ref, o_ref, *, scale):
    q = q_ref[0].astype(BF16)                       # [nh, tq, dq]
    k = k_ref[0].astype(BF16)                       # [nh, T, dq]
    v = v_ref[0].astype(BF16)                       # [nh, T, dv]
    s = jnp.einsum('htd,hsd->hts', q, k, preferred_element_type=jnp.float32) * scale
    s = s - jnp.max(s, axis=-1, keepdims=True)
    p = jnp.exp(s)
    p = p * pl.reciprocal(jnp.sum(p, axis=-1, keepdims=True), approx=True)
    o = jnp.einsum('hts,hsd->htd', p.astype(BF16), v, preferred_element_type=jnp.float32)
    o_ref[0] = o.astype(o_ref.dtype)


def multihead_attention(q, k, v, *, out_dtype=BF16, tile_q=256):
    """q,k:[B,nh,T,dq] v:[B,nh,T,dv] -> [B,nh,T,dv]; tiled over query blocks."""
    B, nh, T, dq = q.shape
    dv = v.shape[-1]
    tq = min(tile_q, _round_up(T, 8))
    Tp = _round_up(T, tq)
    qp = jnp.pad(q, ((0, 0), (0, 0), (0, Tp - T), (0, 0))) if Tp != T else q
    out = pl.pallas_call(
        functools.partial(_attn_kernel, scale=1.0 / math.sqrt(dq)),
        out_shape=jax.ShapeDtypeStruct((B, nh, Tp, dv), out_dtype),
        grid=(B, Tp // tq),
        in_specs=[pl.BlockSpec((1, nh, tq, dq), lambda b, i: (b, 0, i, 0)),
                  pl.BlockSpec((1, nh, T, dq), lambda b, i: (b, 0, 0, 0)),
                  pl.BlockSpec((1, nh, T, dv), lambda b, i: (b, 0, 0, 0))],
        out_specs=pl.BlockSpec((1, nh, tq, dv), lambda b, i: (b, 0, i, 0)),
        compiler_params=pltpu.CompilerParams(
            dimension_semantics=("parallel", "parallel"),
            vmem_limit_bytes=48 * _MB),
    )(qp, k, v)
    return out[:, :, :T] if Tp != T else out


def _split_heads(x, nh, d):
    # [B, T, F, nh*d] -> [B, nh, T, F*d]
    B, T, Fq, _ = x.shape
    return x.reshape(B, T, Fq, nh, d).transpose(0, 3, 1, 2, 4).reshape(B, nh, T, Fq * d)


def _merge_heads(a, Fq, C):
    # [B, nh, T, F*Ch] -> [B, T, F, C]
    B, nh, T, _ = a.shape
    Ch = C // nh
    return a.reshape(B, nh, T, Fq, Ch).transpose(0, 2, 3, 1, 4).reshape(B, T, Fq, C)


# -----------------------------------------------------------------------------
# Bidirectional LSTM (time-chunk streamed) + fused output projection
# -----------------------------------------------------------------------------
def _bilstm_kernel(xf_ref, xb_ref, whf_ref, whb_ref, of_ref, ob_ref,
                   hf_ref, cf_ref, hb_ref, cb_ref):
    tc = xf_ref.shape[0]
    H = hf_ref.shape[-1]

    # Carry scratch is re-initialised whenever the time-chunk axis restarts.
    # Invariant: grid axis 0 (N tiles) is "parallel", axis 1 (time chunks)
    # MUST stay "arbitrary"/sequential for the carry to be valid.
    @pl.when(pl.program_id(1) == 0)
    def _():
        hf_ref[...] = jnp.zeros(hf_ref.shape, F32)
        cf_ref[...] = jnp.zeros(cf_ref.shape, F32)
        hb_ref[...] = jnp.zeros(hb_ref.shape, F32)
        cb_ref[...] = jnp.zeros(cb_ref.shape, F32)

    def one_dir(gates, h_ref, c_ref, wh_ref):
        rec = jnp.dot(h_ref[...].astype(BF16), wh_ref[...],
                      preferred_element_type=jnp.float32)
        g = gates + rec
        ig = jax.nn.sigmoid(g[:, 0 * H:1 * H])
        fg = jax.nn.sigmoid(g[:, 1 * H:2 * H])
        gg = jnp.tanh(g[:, 2 * H:3 * H])
        og = jax.nn.sigmoid(g[:, 3 * H:4 * H])
        c = fg * c_ref[...] + ig * gg
        h = og * jnp.tanh(c)
        c_ref[...] = c
        h_ref[...] = h
        return h

    def step(s, carry):
        hf = one_dir(xf_ref[s], hf_ref, cf_ref, whf_ref)
        of_ref[s] = hf.astype(of_ref.dtype)
        sb = tc - 1 - s                       # backward walks this chunk reversed
        hb = one_dir(xb_ref[sb], hb_ref, cb_ref, whb_ref)
        ob_ref[sb] = hb.astype(ob_ref.dtype)
        return carry

    jax.lax.fori_loop(0, tc, step, 0, unroll=2)


def bilstm(seq, p, w_out, *, tile_n=128, time_chunk=None,
           vmem_budget=20 * _MB, out_dtype=F32):
    """y[n, t] = BiLSTM(seq)[n, t] @ w_out  (PyTorch i,f,g,o gate order).

    seq: [N, T, In]; w_out: [2H, Nout] -> [N, T, Nout].
    2-D grid: N tiles (parallel) x time chunks streamed through VMEM with
    h/c carried in scratch across chunks (backward direction reads/writes the
    mirrored chunk).  Zero padding of the gate pre-activations keeps padded
    steps at h == c == 0 exactly.
    """
    Nb, T, In = seq.shape
    H = p["whh_f"].shape[0]
    G = 4 * H

    # One un-padded matmul per direction (no block-diagonal zeros, no flip).
    seq2d = seq.transpose(1, 0, 2).reshape(T * Nb, In)      # time-major rows
    xf = dense(seq2d, p["wih_f"], p["bih_f"] + p["bhh_f"], act=None).reshape(T, Nb, G)
    xb = dense(seq2d, p["wih_b"], p["bih_b"] + p["bhh_b"], act=None).reshape(T, Nb, G)

    tn = min(tile_n, _round_up(Nb, 8))
    Np = _round_up(Nb, tn)
    step_bytes = tn * (2 * G * 4 + 2 * H * 2)               # xf+xb f32, of+ob bf16
    tc = int(time_chunk) if time_chunk is not None else max(
        1, vmem_budget // max(2 * step_bytes, 1))
    tc = max(1, min(tc, _round_up(T, 8)))
    Tp = _round_up(T, tc)
    nc = Tp // tc
    if Np != Nb or Tp != T:
        pad = ((0, Tp - T), (0, Np - Nb), (0, 0))
        xf = jnp.pad(xf, pad)
        xb = jnp.pad(xb, pad)

    of, ob = pl.pallas_call(
        _bilstm_kernel,
        out_shape=(jax.ShapeDtypeStruct((Tp, Np, H), BF16),
                   jax.ShapeDtypeStruct((Tp, Np, H), BF16)),
        grid=(Np // tn, nc),
        in_specs=[pl.BlockSpec((tc, tn, G), lambda i, j: (j, i, 0)),
                  pl.BlockSpec((tc, tn, G), lambda i, j: (nc - 1 - j, i, 0)),
                  pl.BlockSpec((H, G), lambda i, j: (0, 0)),
                  pl.BlockSpec((H, G), lambda i, j: (0, 0))],
        out_specs=[pl.BlockSpec((tc, tn, H), lambda i, j: (j, i, 0)),
                   pl.BlockSpec((tc, tn, H), lambda i, j: (nc - 1 - j, i, 0))],
        scratch_shapes=[pltpu.VMEM((tn, H), F32) for _ in range(4)],
        compiler_params=pltpu.CompilerParams(
            dimension_semantics=("parallel", "arbitrary"),
            vmem_limit_bytes=48 * _MB),
    )(xf, xb, jnp.asarray(p["whh_f"], BF16), jnp.asarray(p["whh_b"], BF16))

    # Fused [h_f | h_b] @ w_out without concatenating the halves in HBM.
    y = dense_dual(of.reshape(Tp * Np, H), ob.reshape(Tp * Np, H),
                   w_out[:H], w_out[H:], out_dtype=out_dtype)
    y = y.reshape(Tp, Np, -1).transpose(1, 0, 2)
    return y[:Nb, :T]


def _bilstm_ref(seq, p, w_out):
    """Pure-JAX f32 reference for correctness checking."""
    def lstm(x, wih, whh, bih, bhh):
        Hh = whh.shape[0]

        def step(carry, xt):
            h, c = carry
            g = xt @ wih + h @ whh + bih + bhh
            i = jax.nn.sigmoid(g[:, :Hh])
            f = jax.nn.sigmoid(g[:, Hh:2 * Hh])
            gg = jnp.tanh(g[:, 2 * Hh:3 * Hh])
            o = jax.nn.sigmoid(g[:, 3 * Hh:])
            c = f * c + i * gg
            h = o * jnp.tanh(c)
            return (h, c), h

        N = x.shape[0]
        init = (jnp.zeros((N, Hh), F32), jnp.zeros((N, Hh), F32))
        _, hs = jax.lax.scan(step, init, x.transpose(1, 0, 2))
        return hs.transpose(1, 0, 2)

    hf = lstm(seq.astype(F32), p["wih_f"], p["whh_f"], p["bih_f"], p["bhh_f"])
    hb = lstm(jnp.flip(seq.astype(F32), 1), p["wih_b"], p["whh_b"], p["bih_b"], p["bhh_b"])
    hb = jnp.flip(hb, 1)
    return jnp.concatenate([hf, hb], -1) @ w_out


# -----------------------------------------------------------------------------
# Fused ConvTranspose1d overlap-add + bias + residual
# -----------------------------------------------------------------------------
def _ct_ola_kernel(y_ref, r_ref, b_ref, o_ref, *, ks, C, nw):
    o_ref[...] = r_ref[...] + b_ref[...]
    for k in range(ks):
        o_ref[:, k:k + nw, :] = (o_ref[:, k:k + nw, :]
                                 + y_ref[:, :, k * C:(k + 1) * C])


def ct_overlap_add(y, resid, bias, ks):
    """y:[M,nw,ks*C] taps; resid:[M,out_len,C]; returns resid + CT1d(y) + bias."""
    M, nw, KC = y.shape
    C = KC // ks
    out_len = resid.shape[1]
    assert out_len == nw + ks - 1
    b3 = jnp.asarray(bias, F32).reshape(1, 1, C)
    row_bytes = (nw * KC + 2 * out_len * C) * 4
    tile_m = max(1, min(256, (4 * _MB) // max(row_bytes, 1)))
    if M <= tile_m:
        tm, Mp, yp, rp = M, M, y, resid
    else:
        tm = tile_m
        Mp = _round_up(M, tm)
        yp = jnp.pad(y, ((0, Mp - M), (0, 0), (0, 0))) if Mp != M else y
        rp = jnp.pad(resid, ((0, Mp - M), (0, 0), (0, 0))) if Mp != M else resid
    out = pl.pallas_call(
        functools.partial(_ct_ola_kernel, ks=ks, C=C, nw=nw),
        out_shape=jax.ShapeDtypeStruct((Mp, out_len, C), F32),
        grid=(Mp // tm,),
        in_specs=[pl.BlockSpec((tm, nw, KC), lambda i: (i, 0, 0)),
                  pl.BlockSpec((tm, out_len, C), lambda i: (i, 0, 0)),
                  pl.BlockSpec((1, 1, C), lambda i: (0, 0, 0))],
        out_specs=pl.BlockSpec((tm, out_len, C), lambda i: (i, 0, 0)),
        compiler_params=pltpu.CompilerParams(dimension_semantics=("parallel",)),
    )(yp.astype(F32), rp.astype(F32), b3)
    return out[:M] if Mp != M else out


# -----------------------------------------------------------------------------
# RMS normalize / band gate / conv helpers
# -----------------------------------------------------------------------------
def _rms_kernel(x_ref, o_ref, s_ref):
    # TODO(synk): RMSNormalizeInput source unavailable; RMS over (C, L) assumed.
    x = x_ref[...]
    std = jnp.sqrt(jnp.mean(x * x, axis=-1, keepdims=True) + 1e-10)
    s_ref[...] = std
    o_ref[...] = x / std


def rms_normalize(x):
    B, C, L = x.shape
    out, std = pl.pallas_call(
        _rms_kernel,
        out_shape=(jax.ShapeDtypeStruct((B, C * L), F32),
                   jax.ShapeDtypeStruct((B, 1), F32)),
        in_specs=[_full_spec((B, C * L))],
        out_specs=(_full_spec((B, C * L)), _full_spec((B, 1))),
    )(x.reshape(B, C * L).astype(F32))
    return out.reshape(B, C, L), std.reshape(B, 1, 1)


def _gate_kernel(x_ref, f_ref, b_ref, o_ref):
    o_ref[...] = x_ref[...] * jax.nn.sigmoid(f_ref[...]) + b_ref[...]


def band_filter_gate(x, f, b, p):
    # TODO(synk): BandFilterGate source unavailable; x*sigmoid(Wf*f)+Wb*b assumed.
    B, T, Fq, C = x.shape
    D = Fq * C
    fg = (f * p["wf"][None]).reshape(B, 1, D).astype(F32)
    bg = (b * p["wb"][None]).reshape(B, 1, D).astype(F32)
    xr = x.reshape(B, T, D)
    tt = max(8, min(512, _round_up((2 * _MB) // max(D * 8, 1), 8)))
    if T <= tt:
        tt, Tp, xp = T, T, xr
    else:
        Tp = _round_up(T, tt)
        xp = jnp.pad(xr, ((0, 0), (0, Tp - T), (0, 0)))
    out = pl.pallas_call(
        _gate_kernel,
        out_shape=jax.ShapeDtypeStruct((B, Tp, D), F32),
        grid=(B, Tp // tt),
        in_specs=[pl.BlockSpec((1, tt, D), lambda i, j: (i, j, 0)),
                  pl.BlockSpec((1, 1, D), lambda i, j: (i, 0, 0)),
                  pl.BlockSpec((1, 1, D), lambda i, j: (i, 0, 0))],
        out_specs=pl.BlockSpec((1, tt, D), lambda i, j: (i, j, 0)),
        compiler_params=pltpu.CompilerParams(
            dimension_semantics=("parallel", "parallel")),
    )(xp.astype(F32), fg, bg)
    out = out[:, :T] if Tp != T else out
    return out.reshape(B, T, Fq, C)


def conv2d_nhwc(x, w, b, kt, kf, pad_t, pad_f, alpha=None, act=None, out_dtype=F32):
    """Channels-last stride-1 'same' conv via im2col + tiled Pallas matmul."""
    # TODO(synk): im2col duplicates the map kt*kf times in HBM; acceptable for
    # these 3x3/5x5 kernels, replace with in-kernel shifted windows for large maps.
    B, T, Fq, Cin = x.shape
    xp = jnp.pad(x, ((0, 0), (pad_t, pad_t), (pad_f, pad_f), (0, 0)))
    cols = [xp[:, dt:dt + T, df:df + Fq, :] for dt in range(kt) for df in range(kf)]
    cols = jnp.concatenate(cols, axis=-1)
    y = dense(cols.reshape(B * T * Fq, kt * kf * Cin), w, b, alpha,
              act=act, out_dtype=out_dtype)
    return y.reshape(B, T, Fq, -1)


# -----------------------------------------------------------------------------
# STFT / iSTFT (DFT basis matmul in Pallas; framing / OLA are vectorized glue)
# -----------------------------------------------------------------------------
def hann_window(n):
    i = jnp.arange(n, dtype=F32)
    return 0.5 - 0.5 * jnp.cos(2.0 * jnp.pi * i / n)


def stft(wave, n_fft, hop):
    B, L = wave.shape
    pad = n_fft // 2
    xp = jnp.pad(wave, ((0, 0), (pad, pad)), mode="reflect")
    T = 1 + (xp.shape[1] - n_fft) // hop
    idx = (jnp.arange(T) * hop)[:, None] + jnp.arange(n_fft)[None, :]
    frames = xp[:, idx] * hann_window(n_fft)[None, None, :]
    Fq = n_fft // 2 + 1
    n = jnp.arange(n_fft, dtype=F32)[:, None]
    f = jnp.arange(Fq, dtype=F32)[None, :]
    ang = 2.0 * jnp.pi * n * f / n_fft
    basis = jnp.concatenate([jnp.cos(ang), -jnp.sin(ang)], axis=1)      # [n_fft, 2F]
    spec = dense(frames.reshape(B * T, n_fft), basis, act=None, compute_dtype=F32)
    spec = spec.reshape(B, T, 2 * Fq)
    return spec[..., :Fq], spec[..., Fq:]


def istft(real, imag, n_fft, hop, audio_length):
    # TODO(synk): WaveGeneratorByISTFT source unavailable; torch.istft semantics
    # (hann, center=True, window-square OLA normalization) assumed.
    B, S, T, Fq = real.shape
    n = jnp.arange(n_fft, dtype=F32)[None, :]
    f = jnp.arange(Fq, dtype=F32)[:, None]
    scale = jnp.where((f == 0) | (f == Fq - 1), 1.0, 2.0) / n_fft
    ang = 2.0 * jnp.pi * f * n / n_fft
    basis = jnp.concatenate([scale * jnp.cos(ang), -scale * jnp.sin(ang)], axis=0)
    spec = jnp.concatenate([real, imag], axis=-1).reshape(B * S * T, 2 * Fq)
    frames = dense(spec, basis, act=None, compute_dtype=F32).reshape(B * S, T, n_fft)
    win = hann_window(n_fft)
    frames = frames * win[None, None, :]
    L = (T - 1) * hop + n_fft
    pos = ((jnp.arange(T) * hop)[:, None] + jnp.arange(n_fft)[None, :]).reshape(-1)
    sig = jnp.zeros((B * S, L), F32).at[:, pos].add(frames.reshape(B * S, T * n_fft))
    wsq = jnp.zeros((L,), F32).at[pos].add(jnp.tile(win * win, T))
    sig = sig / jnp.maximum(wsq, 1e-8)[None, :]
    pad = n_fft // 2
    return sig[:, pad:pad + audio_length].reshape(B, S, audio_length)


# -----------------------------------------------------------------------------
# TF-GridNet modules (channels-last [B, T, F, C])
# -----------------------------------------------------------------------------
def dimension_embedding(spec, p):
    x = conv2d_nhwc(spec, p["w"], p["b"], 3, 3, 1, 1)
    return group_norm1(x, p["gn_g"], p["gn_b"])


def tf_gridnet_block(x, p, cfg):
    """Intra-(freq) BLSTM path + inter-(time) BLSTM path + full-band attention."""
    B, T, Fq, C = x.shape
    ks = cfg["emb_ks"]
    assert cfg["emb_hs"] == 1
    n_head, E = cfg["n_head"], cfg["qk"]
    nhE = n_head * E

    # ---- intra (frequency) ----
    xn = channel_ln(x, p["intra_ln_g"], p["intra_ln_b"], out_dtype=BF16)
    nwf = Fq - ks + 1
    widx = jnp.arange(nwf)[:, None] + jnp.arange(ks)[None, :]
    seq = xn[:, :, widx, :].reshape(B * T, nwf, ks * C)
    y = bilstm(seq, p["intra_lstm"], p["intra_ct_w"])               # [B*T, nwf, ks*C]
    intra = ct_overlap_add(y, x.reshape(B * T, Fq, C), p["intra_ct_b"], ks)
    intra = intra.reshape(B, T, Fq, C)

    # ---- inter (time) ----
    xf = intra.transpose(0, 2, 1, 3)                                 # [B, F, T, C]
    xn = channel_ln(xf, p["inter_ln_g"], p["inter_ln_b"], out_dtype=BF16)
    nwt = T - ks + 1
    widx = jnp.arange(nwt)[:, None] + jnp.arange(ks)[None, :]
    seq = xn[:, :, widx, :].reshape(B * Fq, nwt, ks * C)
    y = bilstm(seq, p["inter_lstm"], p["inter_ct_w"])                # [B*F, nwt, ks*C]
    inter = ct_overlap_add(y, xf.reshape(B * Fq, T, C), p["inter_ct_b"], ks)
    inter = inter.reshape(B, Fq, T, C).transpose(0, 2, 1, 3)         # [B, T, F, C]

    # ---- full-band multi-head self-attention (fused q/k/v projection) ----
    wqkv = jnp.concatenate([p["q_w"], p["k_w"], p["v_w"]], axis=1)
    bqkv = jnp.concatenate([p["q_b"], p["k_b"], p["v_b"]])
    aqkv = jnp.concatenate([jnp.broadcast_to(jnp.asarray(p["q_alpha"], F32), (nhE,)),
                            jnp.broadcast_to(jnp.asarray(p["k_alpha"], F32), (nhE,)),
                            jnp.broadcast_to(jnp.asarray(p["v_alpha"], F32), (C,))])
    qkv = dense(inter.reshape(B * T * Fq, C), wqkv, bqkv, aqkv, act="prelu",
                out_dtype=BF16).reshape(B, T, Fq, 2 * nhE + C)
    q = cf_ln(qkv[..., :nhE], p["q_ln_g"], p["q_ln_b"], out_dtype=BF16)
    k = cf_ln(qkv[..., nhE:2 * nhE], p["k_ln_g"], p["k_ln_b"], out_dtype=BF16)
    v = cf_ln(qkv[..., 2 * nhE:], p["v_ln_g"], p["v_ln_b"], out_dtype=BF16)
    att = multihead_attention(_split_heads(q, n_head, E),
                              _split_heads(k, n_head, E),
                              _split_heads(v, n_head, C // n_head))
    att = _merge_heads(att, Fq, C)
    att = dense(att.reshape(B * T * Fq, C), p["p_w"], p["p_b"], p["p_alpha"],
                act="prelu", out_dtype=F32).reshape(B, T, Fq, C)
    att = cf_ln(att, p["p_ln_g"], p["p_ln_b"])
    return att + inter


def mutual_attention(x, ref, p, cfg):
    # TODO(synk): MutualAttention source unavailable; implemented as cross-attention
    # (Q from x, K/V from ref) using the TFGridnetBlock attention layout + residual.
    B, T, Fq, C = x.shape
    n_head, E = cfg["n_head"], cfg["qk"]
    nhE = n_head * E
    q = dense(x.reshape(-1, C), p["q_w"], p["q_b"], p["q_alpha"], act="prelu",
              out_dtype=BF16).reshape(B, T, Fq, nhE)
    q = cf_ln(q, p["q_ln_g"], p["q_ln_b"], out_dtype=BF16)
    wkv = jnp.concatenate([p["k_w"], p["v_w"]], axis=1)
    bkv = jnp.concatenate([p["k_b"], p["v_b"]])
    akv = jnp.concatenate([jnp.broadcast_to(jnp.asarray(p["k_alpha"], F32), (nhE,)),
                           jnp.broadcast_to(jnp.asarray(p["v_alpha"], F32), (C,))])
    kv = dense(ref.reshape(-1, C), wkv, bkv, akv, act="prelu",
               out_dtype=BF16).reshape(B, T, Fq, nhE + C)
    k = cf_ln(kv[..., :nhE], p["k_ln_g"], p["k_ln_b"], out_dtype=BF16)
    v = cf_ln(kv[..., nhE:], p["v_ln_g"], p["v_ln_b"], out_dtype=BF16)
    att = multihead_attention(_split_heads(q, n_head, E),
                              _split_heads(k, n_head, E),
                              _split_heads(v, n_head, C // n_head))
    att = _merge_heads(att, Fq, C)
    att = dense(att.reshape(-1, C), p["p_w"], p["p_b"], p["p_alpha"], act="prelu",
                out_dtype=F32).reshape(B, T, Fq, C)
    att = cf_ln(att, p["p_ln_g"], p["p_ln_b"])
    return att + x


def sequence_embed(x, ref, p, cfg):
    # TODO(synk): SequenceEmbed source unavailable; 5x5 conv over concat(x, ref),
    # PReLU, mean over frames, split into (filter f, bias b) of shape [B, F, D].
    D = cfg["emb_dim"]
    z = jnp.concatenate([x, ref], axis=-1)
    y = conv2d_nhwc(z, p["w"], p["b"], 5, 5, 2, 2, alpha=p["alpha"], act="prelu")
    y = jnp.mean(y, axis=1)                                          # [B, F, 2D]
    return y[..., :D], y[..., D:]


# -----------------------------------------------------------------------------
# Encoder / Decoder / full model
# -----------------------------------------------------------------------------
def tf_gridnet_encoder(wave, params, cfg):
    B, L = wave.shape
    xn, std = rms_normalize(wave[:, None, :])
    real, imag = stft(xn[:, 0, :], cfg["n_fft"], cfg["hop"])
    spec = jnp.stack([real, imag], axis=-1)                          # [B, T, F, 2]
    x = dimension_embedding(spec, params["dim_emb"])                 # [B, T, F, D]
    for bp in params["blocks"]:
        x = tf_gridnet_block(x, bp, cfg)
    return x, std, L


def tf_gridnet_decoder(x, f, b, std, audio_length, params, cfg):
    for bp, gp in zip(params["blocks"], params["gates"]):
        x = tf_gridnet_block(x, bp, cfg)
        x = band_filter_gate(x, f, b, gp)
    # TODO(synk): TFGridnetDeconv source unavailable; ConvTranspose2d(stride 1)
    # is parameterized directly as a same-padding conv here.
    y = conv2d_nhwc(x, params["deconv"]["w"], params["deconv"]["b"], 3, 3, 1, 1)
    B, T, Fq, _ = y.shape
    S = cfg["n_srcs"]
    y = y.reshape(B, T, Fq, 2, S).transpose(3, 0, 4, 1, 2)           # [2, B, S, T, F]
    wav = istft(y[0], y[1], cfg["n_fft"], cfg["hop"], audio_length)  # [B, S, L]
    return wav * std


def encoder_split_decoder(inp, ref, params, cfg):
    x, std, L = tf_gridnet_encoder(inp, params["encoder"], cfg)
    ref_i, _, _ = tf_gridnet_encoder(ref, params["encoder"], cfg)
    f, b = sequence_embed(x, ref_i, params["seq_embed"], cfg)
    x = mutual_attention(x, ref_i, params["split"], cfg)
    wav = tf_gridnet_decoder(x, f, b, std, L, params["decoder"], cfg)
    return wav[:, 0]


# -----------------------------------------------------------------------------
# Deterministic parameter initialization
# -----------------------------------------------------------------------------
def _w(key, shape, scale=0.1):
    return scale * jax.random.normal(key, shape, F32)


def _init_lstm(key, in_dim, hidden):
    k = jax.random.split(key, 4)
    return {
        "wih_f": _w(k[0], (in_dim, 4 * hidden)), "whh_f": _w(k[1], (hidden, 4 * hidden)),
        "bih_f": jnp.zeros((4 * hidden,), F32), "bhh_f": jnp.zeros((4 * hidden,), F32),
        "wih_b": _w(k[2], (in_dim, 4 * hidden)), "whh_b": _w(k[3], (hidden, 4 * hidden)),
        "bih_b": jnp.zeros((4 * hidden,), F32), "bhh_b": jnp.zeros((4 * hidden,), F32),
    }


def _init_attn(key, cfg):
    D, nh, E, Fq = cfg["emb_dim"], cfg["n_head"], cfg["qk"], cfg["n_freqs"]
    k = jax.random.split(key, 4)
    a = lambda: jnp.asarray(0.25, F32)
    return {
        "q_w": _w(k[0], (D, nh * E)), "q_b": jnp.zeros((nh * E,), F32), "q_alpha": a(),
        "q_ln_g": jnp.ones((Fq * nh * E,), F32), "q_ln_b": jnp.zeros((Fq * nh * E,), F32),
        "k_w": _w(k[1], (D, nh * E)), "k_b": jnp.zeros((nh * E,), F32), "k_alpha": a(),
        "k_ln_g": jnp.ones((Fq * nh * E,), F32), "k_ln_b": jnp.zeros((Fq * nh * E,), F32),
        "v_w": _w(k[2], (D, D)), "v_b": jnp.zeros((D,), F32), "v_alpha": a(),
        "v_ln_g": jnp.ones((Fq * D,), F32), "v_ln_b": jnp.zeros((Fq * D,), F32),
        "p_w": _w(k[3], (D, D)), "p_b": jnp.zeros((D,), F32), "p_alpha": a(),
        "p_ln_g": jnp.ones((Fq * D,), F32), "p_ln_b": jnp.zeros((Fq * D,), F32),
    }


def _init_block(key, cfg):
    D, H, ks = cfg["emb_dim"], cfg["hidden"], cfg["emb_ks"]
    k = jax.random.split(key, 5)
    p = {
        "intra_ln_g": jnp.ones((D,), F32), "intra_ln_b": jnp.zeros((D,), F32),
        "intra_lstm": _init_lstm(k[0], D * ks, H),
        "intra_ct_w": _w(k[1], (2 * H, ks * D)), "intra_ct_b": jnp.zeros((D,), F32),
        "inter_ln_g": jnp.ones((D,), F32), "inter_ln_b": jnp.zeros((D,), F32),
        "inter_lstm": _init_lstm(k[2], D * ks, H),
        "inter_ct_w": _w(k[3], (2 * H, ks * D)), "inter_ct_b": jnp.zeros((D,), F32),
    }
    p.update(_init_attn(k[4], cfg))
    return p


def build_params(key, cfg):
    D, Fq, S = cfg["emb_dim"], cfg["n_freqs"], cfg["n_srcs"]
    k = jax.random.split(key, 8)
    enc_blocks = [_init_block(kk, cfg) for kk in jax.random.split(k[0], cfg["n_enc_layers"])]
    dec_blocks = [_init_block(kk, cfg) for kk in jax.random.split(k[1], cfg["n_dec_layers"])]
    gates = [{"wf": _w(ka, (Fq, D)), "wb": _w(kb, (Fq, D))}
             for ka, kb in zip(jax.random.split(k[2], cfg["n_dec_layers"]),
                               jax.random.split(k[3], cfg["n_dec_layers"]))]
    return {
        "encoder": {
            "dim_emb": {"w": _w(k[4], (3 * 3 * 2, D)), "b": jnp.zeros((D,), F32),
                        "gn_g": jnp.ones((D,), F32), "gn_b": jnp.zeros((D,), F32)},
            "blocks": enc_blocks,
        },
        "seq_embed": {"w": _w(k[5], (5 * 5 * 2 * D, 2 * D)),
                      "b": jnp.zeros((2 * D,), F32), "alpha": jnp.asarray(0.25, F32)},
        "split": _init_attn(k[6], cfg),
        "decoder": {"blocks": dec_blocks, "gates": gates,
                    "deconv": {"w": _w(k[7], (3 * 3 * D, 2 * S)),
                               "b": jnp.zeros((2 * S,), F32)}},
    }


# -----------------------------------------------------------------------------
if __name__ == "__main__":
    cfg = dict(n_fft=32, hop=16, n_freqs=17, emb_dim=16, emb_ks=4, emb_hs=1,
               hidden=16, n_head=2, qk=4, n_srcs=1, n_enc_layers=1, n_dec_layers=1)

    key = jax.random.PRNGKey(0)
    k_in, k_ref = jax.random.split(key, 2)
    B, L = 2, 128
    mixture = 0.1 * jax.random.normal(k_in, (B, L), F32)      # "input" waveform
    reference = 0.1 * jax.random.normal(k_ref, (B, L), F32)   # "ref" enrollment waveform

    params = build_params(jax.random.PRNGKey(42), cfg)

    # Sanity 1: gridded + padded tiled dense path.
    xt = jax.random.normal(jax.random.PRNGKey(1), (1500, 96), F32)
    wt = 0.05 * jax.random.normal(jax.random.PRNGKey(2), (96, 128), F32)
    yt = jax.block_until_ready(dense(xt, wt))
    assert yt.shape == (1500, 128) and bool(jnp.all(jnp.isfinite(yt)))

    # Sanity 2: time-chunked BiLSTM (3 chunks + time padding) vs pure-JAX reference.
    seq_t = 0.5 * jax.random.normal(jax.random.PRNGKey(3), (8, 40, 24), F32)
    lstm_p = _init_lstm(jax.random.PRNGKey(4), 24, 16)
    ct_w = 0.1 * jax.random.normal(jax.random.PRNGKey(5), (32, 48), F32)
    y_pl = jax.block_until_ready(bilstm(seq_t, lstm_p, ct_w, time_chunk=16))
    y_rf = _bilstm_ref(seq_t, lstm_p, ct_w)
    assert float(jnp.max(jnp.abs(y_pl - y_rf))) < 5e-2

    fwd = jax.jit(functools.partial(encoder_split_decoder, cfg=cfg))
    out = jax.block_until_ready(fwd(mixture, reference, params))

    assert out.shape == (B, L), out.shape
    assert bool(jnp.all(jnp.isfinite(out)))
    print("KERNEL_OK")
</pallas_src>

<mosaic_0001>
module attributes {stable_mosaic.version = 11 : i64} {
  func.func @_dense_kernel(%arg0: i32, %arg1: memref<1496x96xf32, #tpu.memory_space<vmem>>, %arg2: memref<96x128xbf16, #tpu.memory_space<vmem>>, %arg3: memref<1x128xf32, #tpu.memory_space<vmem>>, %arg4: memref<1496x128xf32, #tpu.memory_space<vmem>>) attributes {dimension_semantics = [#tpu.dimension_semantics<parallel>], iteration_bounds = array<i64: 2>, scalar_prefetch = 0 : i64, scratch_operands = 0 : i64, tpu.core_type = #tpu.core_type<tc>, window_params = [{transform_indices = @transform_0, window_bounds = array<i64: 1496, 96>}, {pipeline_mode = #tpu.pipeline_mode<synchronous>, transform_indices = @transform_1, window_bounds = array<i64: 96, 128>}, {pipeline_mode = #tpu.pipeline_mode<synchronous>, transform_indices = @transform_2, window_bounds = array<i64: 1, 128>}, {transform_indices = @transform_3, window_bounds = array<i64: 1496, 128>}]} {
    %c0 = arith.constant 0 : index
    %c0_0 = arith.constant 0 : index
    %0 = vector.load %arg1[%c0, %c0_0] : memref<1496x96xf32, #tpu.memory_space<vmem>>, vector<1496x96xf32>
    %1 = arith.truncf %0 : vector<1496x96xf32> to vector<1496x96xbf16>
    %c0_1 = arith.constant 0 : index
    %c0_2 = arith.constant 0 : index
    %2 = vector.load %arg2[%c0_1, %c0_2] : memref<96x128xbf16, #tpu.memory_space<vmem>>, vector<96x128xbf16>
    %cst = arith.constant dense<0.000000e+00> : vector<1496x128xf32>
    %3 = tpu.matmul %1, %2, %cst {dimension_numbers = #tpu.dot_dimension_numbers<[1], [0], [0], [1], [0, 0, 1, 1], [], []>} : vector<1496x96xbf16>, vector<96x128xbf16>, vector<1496x128xf32> -> vector<1496x128xf32>
    %c0_3 = arith.constant 0 : index
    %c0_4 = arith.constant 0 : index
    %4 = vector.load %arg3[%c0_3, %c0_4] : memref<1x128xf32, #tpu.memory_space<vmem>>, vector<1x128xf32>
    %5 = vector.broadcast %4 : vector<1x128xf32> to vector<1496x128xf32>
    %6 = arith.addf %3, %5 : vector<1496x128xf32>
    %c0_5 = arith.constant 0 : index
    %c0_6 = arith.constant 0 : index
    %7 = vector.load %arg4[%c0_5, %c0_6] : memref<1496x128xf32, #tpu.memory_space<vmem>>, vector<1496x128xf32>
    tpu.vector_store %arg4[%c0_5, %c0_6], %6 {strides = array<i32>} : memref<1496x128xf32, #tpu.memory_space<vmem>>, vector<1496x128xf32>,
    return
  }
  func.func @transform_0(%arg0: i32) -> (i32, i32) {
    %c0_i32 = arith.constant 0 : i32
    %c0_i32_0 = arith.constant 0 : i32
    return %arg0, %c0_i32 : i32, i32
  }
  func.func @transform_1(%arg0: i32) -> (i32, i32) {
    %c0_i32 = arith.constant 0 : i32
    %c0_i32_0 = arith.constant 0 : i32
    %c0_i32_1 = arith.constant 0 : i32
    return %c0_i32, %c0_i32_0 : i32, i32
  }
  func.func @transform_2(%arg0: i32) -> (i32, i32) {
    %c0_i32 = arith.constant 0 : i32
    %c0_i32_0 = arith.constant 0 : i32
    %c0_i32_1 = arith.constant 0 : i32
    return %c0_i32, %c0_i32_0 : i32, i32
  }
  func.func @transform_3(%arg0: i32) -> (i32, i32) {
    %c0_i32 = arith.constant 0 : i32
    %c0_i32_0 = arith.constant 0 : i32
    return %arg0, %c0_i32 : i32, i32
  }
}

</mosaic_0001>

<bundles_post_ra>
// kernel: tpu_custom_call.1
= control target key start
LH: loop header
LB: loop body
LE: loop exit
PB: predicated region body
PF: predicated region fallthrough
CT: control target
= control target key end

     0   :  { %8 = vsyncpa [#allocation3], 0  ;;  %s3169_s0 = inlined_call_operand.vmem [shape: f32[2992,96], index: 0, kind: input, shape index: {}]   ;;  %s3170_s1 = inlined_call_operand.vmem [shape: bf16[96,128], index: 1, kind: input, shape index: {}]   ;;  %s3171_s2 = inlined_call_operand.vmem [shape: f32[1,128], index: 2, kind: input, shape index: {}]   ;;  %s3172_s3 = inlined_call_operand.hbm [shape: f32[2992,128], index: 3, kind: output, shape index: {}]  }
   0x1   :  { %10 = vsyncpa [#allocation3 + $0x1], 0  ;;  %s2395_s12 = smov 0   ;;  %s2397_s13 = smov 0  }
   0x2   :  { %s2399_s14 = smov 0   ;;  %s2401_s15 = smov 0  }
   0x3 LB: > { %s2416_s16 = sadd.s32 4294967295, %s2370_s15   ;;  %s1839_s17 = sadd.s32 4294967294, %s2370_s15   ;;  %s2370_s15 = sphi %s2401_s15, %s3178_s15   ;;  %s2366_s14 = sphi %s2399_s14, %s3177_s14   ;;  %s2362_s13 = sphi %s2397_s13, %s3176_s13   ;;  %s2358_s12 = sphi %s2395_s12, %s3175_s12  }
   0x4   : > { %s2420_s18 = sadd.s32 1, %s2370_s15   ;;  %s91_s19 = sadd.s32 1, %s2366_s14 }
   0x5   : > { %s88_s20 = ssub.s32 %s2370_s15, %s2420_s18  ;;  %p101_p0 = scmp.ne.s32.totalorder %s2366_s14, %s2362_s13 }
   0x6   : > { %p89_p1 = scmp.eq.s32.totalorder %s88_s20, 0  ;;  %p102_p2 = scmp.eq.s32.totalorder %s2416_s16, 1 }
   0x7   : > { %p107_p3 = scmp.ne.s32.totalorder %s2362_s13, %s2358_s12  ;;  %p108_p4 = scmp.eq.s32.totalorder %s1839_s17, 1 }
   0x8   : > { %s2431_s21 = scalar_select %p89_p1, %s2366_s14, %s91_s19  }
   0x9   : > { %p2433_p5 = por %p102_p2, %p101_p0  ;;  %p2437_p6 = por %p108_p4, %p107_p3 }
   0xa   : > { %p1842_p7 = scmp.ge.s32.totalorder %s2370_s15, 1  ;;  %p141_p8 = scmp.lt.s32.totalorder %s2370_s15, 3 }
   0xc   : > { %p142_p9 = pnand %p1842_p7, %p141_p8 }
   0xd   : > { %s165_s26 = smul.u32 (!%p142_p9), 187, %s2416_s16  ;;  %s162_s20 = sand.u32 (!%p142_p9), 1, %s2362_s13  }
   0xe   : > { %145 = sbr.rel (%p142_p9) target bundleno = 443 (0x1bb), region = 32  ;;  %s2372_s9 = smov (!%p142_p9), [#allocation2]  }
   0xf   : > { %p166_p10 = scmp.lt.s32.totalorder (!%p142_p9), %s165_s26, 373  ;;  %s2261_s24 = smul.u32 (!%p142_p9), 1496, %s162_s20 }
  0x10   : > { %s1948_s30 = smul.u32 (!%p142_p9), 23936, %s2416_s16  ;;  %s3129_s16 = scalar_lea.sflag (!%p142_p9), [#allocation3], %s162_s20 }
  0x11   : > { %s2758_s27 = scalar_lea.vmem (!%p142_p9), [#allocation2], %s2261_s24  ;;  %s2314_s10 = sshll.u32 (!%p142_p9), %s2372_s9, 4  ;;  %s2315_s10 = int_to_ptr.vmem [resolvable:$false] %s2314_s10 }
  0x12   : > { %s2316_s11 = scalar_lea.vmem (!%p142_p9), %s2315_s10, 47872 }
  0x13   : > { %v2303_v0 = vld [vmem:[%s3170_s1 + $0x28] sm:$0xff]   ;;  %v2304_v1 = vld [vmem:[%s3170_s1 + $0x20] sm:$0xff]   ;;  %v2305_v2 = vld [vmem:[%s3170_s1 + $0x18] sm:$0xff]   ;;  %s3180_s26 = smov (!%p166_p10, %s165_s26), 373  ;;  %vm509_vm0 = vcmask 785408  }
  0x14   : > { %2049 = vmatprep.subr.bf16.mxu0 %v2303_v0  ;;  %2249 = vmatprep.subr.bf16.mxu1 %v2303_v0  ;;  %s1843_s4 = sshll.u32 %s3180_s26, 3  ;;  %v2306_v3 = vld [vmem:[%s3170_s1 + $0x10] sm:$0xff]   ;;  %v2307_v10 = vld [vmem:[%s3170_s1 + $0x8] sm:$0xff]   ;;  %v2308_v11 = vld [vmem:[%s3170_s1] sm:$0xff]  }
  0x15   : > { %2050 = vmatpush3.bf16.msra.mxu0 %v2303_v0  ;;  %2255 = vmatpush3.bf16.msra.mxu1 %v2303_v0  ;;  %s2456_s7 = scalar_lea.vmem %s3169_s0, %s1843_s4  ;;  %s1777_s4 = sshll.u32 %s2758_s27, 4  ;;  %s3123_s4 = int_to_ptr.vmem [resolvable:$true] %s1777_s4 }
  0x16   : > { %2051 = vmatprep.subr.bf16.mxu0 %v2304_v1  ;;  %2250 = vmatprep.subr.bf16.mxu1 %v2304_v1  ;;  %v173_v4 = vld [vmem:[%s2456_s7] sm:$0xff]  ;;  %v174_v5 = vld [vmem:[%s2456_s7 + $0x8] sm:$0xff]  ;;  %v175_v12 = vld [vmem:[%s2456_s7 + $0x10] sm:$0xff]  ;;  %s2310_s8 = scalar_lea.vmem %s3123_s4, 23936  ;;  %p2317_p0 = scmp.lt.s32.totalorder %s3123_s4, %s2315_s10 }
  0x17   : > { %v360_v6 = vpack.c.bf16 %v174_v5, %v173_v4  ;;  %v269_v7 = vld [vmem:[%s2456_s7 + $0x300] sm:$0xff]  ;;  %v270_v8 = vld [vmem:[%s2456_s7 + $0x308] sm:$0xff]  ;;  %v176_v13 = vld [vmem:[%s2456_s7 + $0x18] sm:$0xff]  ;;  %p2311_p11 = scmp.ne.s32.totalorder %s3123_s4, %s2310_s8  ;;  %p2318_p1 = scmp.lt.s32.totalorder %s2316_s11, %s2310_s8 }
  0x18   : > { %v408_v9 = vpack.c.bf16 %v270_v8, %v269_v7  ;;  %v271_v14 = vld [vmem:[%s2456_s7 + $0x310] sm:$0xff]  ;;  %v272_v15 = vld [vmem:[%s2456_s7 + $0x318] sm:$0xff]  ;;  %v177_v16 = vld [vmem:[%s2456_s7 + $0x20] sm:$0xff]  ;;  %v361_v20 = vpack.c.bf16 %v176_v13, %v175_v12 }
  0x19   : > { %2052 = vmatpush3.bf16.msra.mxu0 %v2304_v1  ;;  %2256 = vmatpush3.bf16.msra.mxu1 %v2304_v1  ;;  %v178_v17 = vld [vmem:[%s2456_s7 + $0x28] sm:$0xff]  ;;  %v273_v18 = vld [vmem:[%s2456_s7 + $0x320] sm:$0xff]  ;;  %v409_v21 = vpack.c.bf16 %v272_v15, %v271_v14  ;;  %v179_v24 = vld [vmem:[%s2456_s7 + $0x30] sm:$0xff]  ;;  %p2312_p12 = pnand %p2311_p11, %p2433_p5  ;;  %p2319_p2 = por %p2318_p1, %p2317_p0 }
  0x1a   : > { %2053 = vmatprep.subr.bf16.mxu0 %v2305_v2  ;;  %2251 = vmatprep.subr.bf16.mxu1 %v2305_v2  ;;  %v274_v19 = vld [vmem:[%s2456_s7 + $0x328] sm:$0xff]  ;;  %v362_v22 = vpack.c.bf16 %v178_v17, %v177_v16  ;;  %v180_v25 = vld [vmem:[%s2456_s7 + $0x38] sm:$0xff]  ;;  %v275_v26 = vld [vmem:[%s2456_s7 + $0x330] sm:$0xff] }
  0x1b   : > { %2061 = vmatprep.mubr.msk.bf16.mxu0 %vm509_vm0, %v360_v6  ;;  %2157 = vmatprep.mubr.msk.bf16.mxu1 %vm509_vm0, %v408_v9  ;;  %v410_v23 = vpack.c.bf16 %v274_v19, %v273_v18  ;;  %v276_v27 = vld [vmem:[%s2456_s7 + $0x338] sm:$0xff]  ;;  %v181_v28 = vld [vmem:[%s2456_s7 + $0x40] sm:$0xff]  ;;  %v182_v29 = vld [vmem:[%s2456_s7 + $0x48] sm:$0xff]  ;;  %v363_v32 = vpack.c.bf16 %v180_v25, %v179_v24  ;;  %p2313_p13 = pneg %p2312_p12 }
  0x1c   : > { %v277_v30 = vld [vmem:[%s2456_s7 + $0x340] sm:$0xff]  ;;  %v278_v31 = vld [vmem:[%s2456_s7 + $0x348] sm:$0xff]  ;;  %v411_v33 = vpack.c.bf16 %v276_v27, %v275_v26  ;;  %v364_v34 = vpack.c.bf16 %v182_v29, %v181_v28  ;;  %v183_v36 = vld [vmem:[%s2456_s7 + $0x50] sm:$0xff] }
  0x1d   : > { %2054 = vmatpush3.bf16.msra.mxu0 %v2305_v2  ;;  %2257 = vmatpush3.bf16.msra.mxu1 %v2305_v2  ;;  %v412_v35 = vpack.c.bf16 %v278_v31, %v277_v30  ;;  %v184_v37 = vld [vmem:[%s2456_s7 + $0x58] sm:$0xff]  ;;  %v279_v38 = vld [vmem:[%s2456_s7 + $0x350] sm:$0xff]  ;;  %v185_v40 = vld [vmem:[%s2456_s7 + $0x60] sm:$0xff]  ;;  %p2320_p3 = pnand %p2319_p2, %p2313_p13 }
  0x1e   : > { %2055 = vmatprep.subr.bf16.mxu0 %v2306_v3  ;;  %2252 = vmatprep.subr.bf16.mxu1 %v2306_v3  ;;  %v280_v39 = vld [vmem:[%s2456_s7 + $0x358] sm:$0xff]  ;;  %v186_v41 = vld [vmem:[%s2456_s7 + $0x68] sm:$0xff]  ;;  %v281_v42 = vld [vmem:[%s2456_s7 + $0x360] sm:$0xff]  ;;  %v365_v44 = vpack.c.bf16 %v184_v37, %v183_v36 }
  0x1f   : > { %v282_v43 = vld [vmem:[%s2456_s7 + $0x368] sm:$0xff]  ;;  %v413_v45 = vpack.c.bf16 %v280_v39, %v279_v38  ;;  %v366_v46 = vpack.c.bf16 %v186_v41, %v185_v40  ;;  %v187_v48 = vld [vmem:[%s2456_s7 + $0x70] sm:$0xff]  ;;  %v188_v49 = vld [vmem:[%s2456_s7 + $0x78] sm:$0xff] }
  0x20   : > { %v414_v47 = vpack.c.bf16 %v282_v43, %v281_v42  ;;  %v283_v50 = vld [vmem:[%s2456_s7 + $0x370] sm:$0xff]  ;;  %v284_v51 = vld [vmem:[%s2456_s7 + $0x378] sm:$0xff]  ;;  %v189_v52 = vld [vmem:[%s2456_s7 + $0x80] sm:$0xff]  ;;  %v367_v56 = vpack.c.bf16 %v188_v49, %v187_v48 }
  0x21   : > { %2056 = vmatpush3.bf16.msra.mxu0 %v2306_v3  ;;  %2258 = vmatpush3.bf16.msra.mxu1 %v2306_v3  ;;  %v190_v53 = vld [vmem:[%s2456_s7 + $0x88] sm:$0xff]  ;;  %v285_v54 = vld [vmem:[%s2456_s7 + $0x380] sm:$0xff]  ;;  %v415_v57 = vpack.c.bf16 %v284_v51, %v283_v50  ;;  %v191_v60 = vld [vmem:[%s2456_s7 + $0x90] sm:$0xff] }
  0x22   : > { %2057 = vmatprep.subr.bf16.mxu0 %v2307_v10  ;;  %2253 = vmatprep.subr.bf16.mxu1 %v2307_v10  ;;  %v286_v55 = vld [vmem:[%s2456_s7 + $0x388] sm:$0xff]  ;;  %v368_v58 = vpack.c.bf16 %v190_v53, %v189_v52  ;;  %v192_v61 = vld [vmem:[%s2456_s7 + $0x98] sm:$0xff]  ;;  %v287_v62 = vld [vmem:[%s2456_s7 + $0x390] sm:$0xff] }
  0x23   : > { %v416_v59 = vpack.c.bf16 %v286_v55, %v285_v54  ;;  %v288_v63 = vld [vmem:[%s2456_s7 + $0x398] sm:$0xff]  ;;  %v193_v0 = vld [vmem:[%s2456_s7 + $0xa0] sm:$0xff]  ;;  %v194_v1 = vld [vmem:[%s2456_s7 + $0xa8] sm:$0xff]  ;;  %v369_v4 = vpack.c.bf16 %v192_v61, %v191_v60 }
  0x24   : > { %v289_v2 = vld [vmem:[%s2456_s7 + $0x3a0] sm:$0xff]  ;;  %v290_v3 = vld [vmem:[%s2456_s7 + $0x3a8] sm:$0xff]  ;;  %v417_v5 = vpack.c.bf16 %v288_v63, %v287_v62  ;;  %v370_v6 = vpack.c.bf16 %v194_v1, %v193_v0  ;;  %v195_v8 = vld [vmem:[%s2456_s7 + $0xb0] sm:$0xff] }
  0x25   : > { %2058 = vmatpush3.bf16.msra.mxu0 %v2307_v10  ;;  %2259 = vmatpush3.bf16.msra.mxu1 %v2307_v10  ;;  %v418_v7 = vpack.c.bf16 %v290_v3, %v289_v2  ;;  %v196_v9 = vld [vmem:[%s2456_s7 + $0xb8] sm:$0xff]  ;;  %v291_v10 = vld [vmem:[%s2456_s7 + $0x3b0] sm:$0xff]  ;;  %v197_v12 = vld [vmem:[%s2456_s7 + $0xc0] sm:$0xff] }
  0x26   : > { %2059 = vmatprep.subr.bf16.mxu0 %v2308_v11  ;;  %2254 = vmatprep.subr.bf16.mxu1 %v2308_v11  ;;  %v198_v13 = vld [vmem:[%s2456_s7 + $0xc8] sm:$0xff]  ;;  %v293_v14 = vld [vmem:[%s2456_s7 + $0x3c0] sm:$0xff]  ;;  %v371_v16 = vpack.c.bf16 %v196_v9, %v195_v8 }
  0x27   : > { %v294_v15 = vld [vmem:[%s2456_s7 + $0x3c8] sm:$0xff]  ;;  %v372_v18 = vpack.c.bf16 %v198_v13, %v197_v12  ;;  %v201_v24 = vld [vmem:[%s2456_s7 + $0xe0] sm:$0xff] }
  0x28   : > { %v420_v19 = vpack.c.bf16 %v294_v15, %v293_v14  ;;  %v202_v25 = vld [vmem:[%s2456_s7 + $0xe8] sm:$0xff]  ;;  %v297_v26 = vld [vmem:[%s2456_s7 + $0x3e0] sm:$0xff] }
  0x29   : > { %2060 = vmatpush3.bf16.msra.mxu0 %v2308_v11  ;;  %2260 = vmatpush3.bf16.msra.mxu1 %v2308_v11  ;;  %v292_v11 = vld [vmem:[%s2456_s7 + $0x3b8] sm:$0xff]  ;;  %v298_v27 = vld [vmem:[%s2456_s7 + $0x3e8] sm:$0xff]  ;;  %v374_v30 = vpack.c.bf16 %v202_v25, %v201_v24  ;;  %v205_v36 = vld [vmem:[%s2456_s7 + $0x100] sm:$0xff] }
  0x2a   : > { %v419_v17 = vpack.c.bf16 %v292_v11, %v291_v10  ;;  %v422_v31 = vpack.c.bf16 %v298_v27, %v297_v26  ;;  %v206_v37 = vld [vmem:[%s2456_s7 + $0x108] sm:$0xff]  ;;  %v301_v38 = vld [vmem:[%s2456_s7 + $0x400] sm:$0xff] }
  0x2b   : > { %v302_v39 = vld [vmem:[%s2456_s7 + $0x408] sm:$0xff]  ;;  %v376_v42 = vpack.c.bf16 %v206_v37, %v205_v36  ;;  %v209_v48 = vld [vmem:[%s2456_s7 + $0x120] sm:$0xff] }
  0x2c   : > { %2062 = vmatmul.mubr.msk.bf16.vlgmr.msra.gmra.mxu0 %vm509_vm0, %v361_v20  ;;  %2158 = vmatmul.mubr.msk.bf16.vlgmr.msra.gmra.mxu1 %vm509_vm0, %v409_v21  ;;  %v199_v20 = vld [vmem:[%s2456_s7 + $0xd0] sm:$0xff]  ;;  %v200_v21 = vld [vmem:[%s2456_s7 + $0xd8] sm:$0xff]  ;;  %v424_v43 = vpack.c.bf16 %v302_v39, %v301_v38  ;;  %v210_v49 = vld [vmem:[%s2456_s7 + $0x128] sm:$0xff] }
  0x2d   : > { %2065 = vmatprep.mubr.msk.bf16.mxu0 %vm509_vm0, %v362_v22  ;;  %2161 = vmatprep.mubr.msk.bf16.mxu1 %vm509_vm0, %v410_v23  ;;  %v295_v22 = vld [vmem:[%s2456_s7 + $0x3d0] sm:$0xff]  ;;  %v296_v23 = vld [vmem:[%s2456_s7 + $0x3d8] sm:$0xff]  ;;  %v373_v28 = vpack.c.bf16 %v200_v21, %v199_v20  ;;  %v305_v50 = vld [vmem:[%s2456_s7 + $0x420] sm:$0xff]  ;;  %v378_v54 = vpack.c.bf16 %v210_v49, %v209_v48 }
  0x2e   : > { %v421_v29 = vpack.c.bf16 %v296_v23, %v295_v22  ;;  %v306_v51 = vld [vmem:[%s2456_s7 + $0x428] sm:$0xff]  ;;  %v213_v60 = vld [vmem:[%s2456_s7 + $0x140] sm:$0xff] }
  0x2f   : > { %v426_v55 = vpack.c.bf16 %v306_v51, %v305_v50  ;;  %v214_v61 = vld [vmem:[%s2456_s7 + $0x148] sm:$0xff]  ;;  %v309_v62 = vld [vmem:[%s2456_s7 + $0x440] sm:$0xff] }
  0x30   : > { %v310_v63 = vld [vmem:[%s2456_s7 + $0x448] sm:$0xff]  ;;  %v380_v2 = vpack.c.bf16 %v214_v61, %v213_v60  ;;  %v217_v8 = vld [vmem:[%s2456_s7 + $0x160] sm:$0xff] }
  0x31   : > { %v428_v3 = vpack.c.bf16 %v310_v63, %v309_v62  ;;  %v218_v9 = vld [vmem:[%s2456_s7 + $0x168] sm:$0xff]  ;;  %v313_v10 = vld [vmem:[%s2456_s7 + $0x460] sm:$0xff] }
  0x32   : > { %v314_v11 = vld [vmem:[%s2456_s7 + $0x468] sm:$0xff]  ;;  %v382_v14 = vpack.c.bf16 %v218_v9, %v217_v8  ;;  %v221_v20 = vld [vmem:[%s2456_s7 + $0x180] sm:$0xff] }
  0x33   : > { %v430_v15 = vpack.c.bf16 %v314_v11, %v313_v10  ;;  %v222_v21 = vld [vmem:[%s2456_s7 + $0x188] sm:$0xff]  ;;  %v317_v22 = vld [vmem:[%s2456_s7 + $0x480] sm:$0xff] }
  0x34   : > { %2066 = vmatmul.mubr.msk.bf16.gmra.mxu0 %vm509_vm0, %v363_v32  ;;  %2162 = vmatmul.mubr.msk.bf16.gmra.mxu1 %vm509_vm0, %v411_v33  ;;  %v203_v32 = vld [vmem:[%s2456_s7 + $0xf0] sm:$0xff]  ;;  %v204_v33 = vld [vmem:[%s2456_s7 + $0xf8] sm:$0xff]  ;;  %v318_v23 = vld [vmem:[%s2456_s7 + $0x488] sm:$0xff]  ;;  %v384_v26 = vpack.c.bf16 %v222_v21, %v221_v20 }
  0x35   : > { %2069 = vmatprep.mubr.msk.bf16.mxu0 %vm509_vm0, %v364_v34  ;;  %2165 = vmatprep.mubr.msk.bf16.mxu1 %vm509_vm0, %v412_v35  ;;  %v299_v34 = vld [vmem:[%s2456_s7 + $0x3f0] sm:$0xff]  ;;  %v300_v35 = vld [vmem:[%s2456_s7 + $0x3f8] sm:$0xff]  ;;  %v375_v40 = vpack.c.bf16 %v204_v33, %v203_v32  ;;  %v432_v27 = vpack.c.bf16 %v318_v23, %v317_v22  ;;  %v225_v32 = vld [vmem:[%s2456_s7 + $0x1a0] sm:$0xff] }
  0x36   : > { %v423_v41 = vpack.c.bf16 %v300_v35, %v299_v34  ;;  %v226_v33 = vld [vmem:[%s2456_s7 + $0x1a8] sm:$0xff]  ;;  %v321_v34 = vld [vmem:[%s2456_s7 + $0x4a0] sm:$0xff] }
  0x37   : > { %v322_v35 = vld [vmem:[%s2456_s7 + $0x4a8] sm:$0xff]  ;;  %v386_v38 = vpack.c.bf16 %v226_v33, %v225_v32 }
  0x38   : > { %v434_v39 = vpack.c.bf16 %v322_v35, %v321_v34 }
  0x3c   : > { %2070 = vmatmul.mubr.msk.bf16.gmra.mxu0 %vm509_vm0, %v365_v44  ;;  %2166 = vmatmul.mubr.msk.bf16.gmra.mxu1 %vm509_vm0, %v413_v45  ;;  %v207_v44 = vld [vmem:[%s2456_s7 + $0x110] sm:$0xff]  ;;  %v208_v45 = vld [vmem:[%s2456_s7 + $0x118] sm:$0xff] }
  0x3d   : > { %2073 = vmatprep.mubr.msk.bf16.mxu0 %vm509_vm0, %v366_v46  ;;  %2169 = vmatprep.mubr.msk.bf16.mxu1 %vm509_vm0, %v414_v47  ;;  %v303_v46 = vld [vmem:[%s2456_s7 + $0x410] sm:$0xff]  ;;  %v304_v47 = vld [vmem:[%s2456_s7 + $0x418] sm:$0xff]  ;;  %v377_v52 = vpack.c.bf16 %v208_v45, %v207_v44  ;;  %v229_v44 = vld [vmem:[%s2456_s7 + $0x1c0] sm:$0xff] }
  0x3e   : > { %v425_v53 = vpack.c.bf16 %v304_v47, %v303_v46  ;;  %v230_v45 = vld [vmem:[%s2456_s7 + $0x1c8] sm:$0xff]  ;;  %v325_v46 = vld [vmem:[%s2456_s7 + $0x4c0] sm:$0xff] }
  0x3f   : > { %v326_v47 = vld [vmem:[%s2456_s7 + $0x4c8] sm:$0xff]  ;;  %v388_v50 = vpack.c.bf16 %v230_v45, %v229_v44 }
  0x40   : > { %v436_v51 = vpack.c.bf16 %v326_v47, %v325_v46 }
  0x44   : > { %2074 = vmatmul.mubr.msk.bf16.gmra.mxu0 %vm509_vm0, %v367_v56  ;;  %2170 = vmatmul.mubr.msk.bf16.gmra.mxu1 %vm509_vm0, %v415_v57  ;;  %v211_v56 = vld [vmem:[%s2456_s7 + $0x130] sm:$0xff]  ;;  %v212_v57 = vld [vmem:[%s2456_s7 + $0x138] sm:$0xff] }
  0x45   : > { %2077 = vmatprep.mubr.msk.bf16.mxu0 %vm509_vm0, %v368_v58  ;;  %2173 = vmatprep.mubr.msk.bf16.mxu1 %vm509_vm0, %v416_v59  ;;  %v307_v58 = vld [vmem:[%s2456_s7 + $0x430] sm:$0xff]  ;;  %v308_v59 = vld [vmem:[%s2456_s7 + $0x438] sm:$0xff]  ;;  %v379_v0 = vpack.c.bf16 %v212_v57, %v211_v56  ;;  %v233_v56 = vld [vmem:[%s2456_s7 + $0x1e0] sm:$0xff] }
  0x46   : > { %v427_v1 = vpack.c.bf16 %v308_v59, %v307_v58  ;;  %v234_v57 = vld [vmem:[%s2456_s7 + $0x1e8] sm:$0xff]  ;;  %v329_v58 = vld [vmem:[%s2456_s7 + $0x4e0] sm:$0xff] }
  0x47   : > { %v330_v59 = vld [vmem:[%s2456_s7 + $0x4e8] sm:$0xff]  ;;  %v390_v62 = vpack.c.bf16 %v234_v57, %v233_v56 }
  0x48   : > { %v438_v63 = vpack.c.bf16 %v330_v59, %v329_v58 }
  0x4c   : > { %2078 = vmatmul.mubr.msk.bf16.gmra.mxu0 %vm509_vm0, %v369_v4  ;;  %2174 = vmatmul.mubr.msk.bf16.gmra.mxu1 %vm509_vm0, %v417_v5  ;;  %v215_v4 = vld [vmem:[%s2456_s7 + $0x150] sm:$0xff]  ;;  %v216_v5 = vld [vmem:[%s2456_s7 + $0x158] sm:$0xff] }
  0x4d   : > { %2081 = vmatprep.mubr.msk.bf16.mxu0 %vm509_vm0, %v370_v6  ;;  %2177 = vmatprep.mubr.msk.bf16.mxu1 %vm509_vm0, %v418_v7  ;;  %v311_v6 = vld [vmem:[%s2456_s7 + $0x450] sm:$0xff]  ;;  %v312_v7 = vld [vmem:[%s2456_s7 + $0x458] sm:$0xff]  ;;  %v381_v12 = vpack.c.bf16 %v216_v5, %v215_v4  ;;  %v237_v4 = vld [vmem:[%s2456_s7 + $0x200] sm:$0xff] }
  0x4e   : > { %v429_v13 = vpack.c.bf16 %v312_v7, %v311_v6  ;;  %v238_v5 = vld [vmem:[%s2456_s7 + $0x208] sm:$0xff]  ;;  %v333_v6 = vld [vmem:[%s2456_s7 + $0x500] sm:$0xff] }
  0x4f   : > { %v334_v7 = vld [vmem:[%s2456_s7 + $0x508] sm:$0xff]  ;;  %v392_v10 = vpack.c.bf16 %v238_v5, %v237_v4 }
  0x50   : > { %v440_v11 = vpack.c.bf16 %v334_v7, %v333_v6 }
  0x54   : > { %2082 = vmatmul.mubr.msk.bf16.gmra.mxu0 %vm509_vm0, %v371_v16  ;;  %2178 = vmatmul.mubr.msk.bf16.gmra.mxu1 %vm509_vm0, %v419_v17  ;;  %v219_v16 = vld [vmem:[%s2456_s7 + $0x170] sm:$0xff]  ;;  %v220_v17 = vld [vmem:[%s2456_s7 + $0x178] sm:$0xff] }
  0x55   : > { %2085 = vmatprep.mubr.msk.bf16.mxu0 %vm509_vm0, %v372_v18  ;;  %2181 = vmatprep.mubr.msk.bf16.mxu1 %vm509_vm0, %v420_v19  ;;  %v315_v18 = vld [vmem:[%s2456_s7 + $0x470] sm:$0xff]  ;;  %v316_v19 = vld [vmem:[%s2456_s7 + $0x478] sm:$0xff]  ;;  %v383_v24 = vpack.c.bf16 %v220_v17, %v219_v16  ;;  %v241_v16 = vld [vmem:[%s2456_s7 + $0x220] sm:$0xff] }
  0x56   : > { %v431_v25 = vpack.c.bf16 %v316_v19, %v315_v18  ;;  %v242_v17 = vld [vmem:[%s2456_s7 + $0x228] sm:$0xff]  ;;  %v337_v18 = vld [vmem:[%s2456_s7 + $0x520] sm:$0xff] }
  0x57   : > { %v338_v19 = vld [vmem:[%s2456_s7 + $0x528] sm:$0xff]  ;;  %v394_v22 = vpack.c.bf16 %v242_v17, %v241_v16 }
  0x58   : > { %v442_v23 = vpack.c.bf16 %v338_v19, %v337_v18 }
  0x5c   : > { %2086 = vmatmul.mubr.msk.bf16.gmra.mxu0 %vm509_vm0, %v373_v28  ;;  %2182 = vmatmul.mubr.msk.bf16.gmra.mxu1 %vm509_vm0, %v421_v29  ;;  %v223_v28 = vld [vmem:[%s2456_s7 + $0x190] sm:$0xff]  ;;  %v224_v29 = vld [vmem:[%s2456_s7 + $0x198] sm:$0xff] }
  0x5d   : > { %2089 = vmatprep.mubr.msk.bf16.mxu0 %vm509_vm0, %v374_v30  ;;  %2185 = vmatprep.mubr.msk.bf16.mxu1 %vm509_vm0, %v422_v31  ;;  %v319_v30 = vld [vmem:[%s2456_s7 + $0x490] sm:$0xff]  ;;  %v320_v31 = vld [vmem:[%s2456_s7 + $0x498] sm:$0xff]  ;;  %v385_v36 = vpack.c.bf16 %v224_v29, %v223_v28  ;;  %v245_v28 = vld [vmem:[%s2456_s7 + $0x240] sm:$0xff] }
  0x5e   : > { %v433_v37 = vpack.c.bf16 %v320_v31, %v319_v30  ;;  %v246_v29 = vld [vmem:[%s2456_s7 + $0x248] sm:$0xff]  ;;  %v341_v30 = vld [vmem:[%s2456_s7 + $0x540] sm:$0xff] }
  0x5f   : > { %v342_v31 = vld [vmem:[%s2456_s7 + $0x548] sm:$0xff]  ;;  %v396_v34 = vpack.c.bf16 %v246_v29, %v245_v28  ;;  %v267_v28 = vld [vmem:[%s2456_s7 + $0x2f0] sm:$0xff]  ;;  %v268_v29 = vld [vmem:[%s2456_s7 + $0x2f8] sm:$0xff] }
  0x60   : > { %v444_v35 = vpack.c.bf16 %v342_v31, %v341_v30  ;;  %v407_v30 = vpack.c.bf16 %v268_v29, %v267_v28  ;;  %v2754_v31 = vld [vmem:[%s3171_s2] ss:$0 sm:$0xff] }
  0x64   : > { %2090 = vmatmul.mubr.msk.bf16.gmra.mxu0 %vm509_vm0, %v375_v40  ;;  %2186 = vmatmul.mubr.msk.bf16.gmra.mxu1 %vm509_vm0, %v423_v41  ;;  %v227_v40 = vld [vmem:[%s2456_s7 + $0x1b0] sm:$0xff]  ;;  %v228_v41 = vld [vmem:[%s2456_s7 + $0x1b8] sm:$0xff] }
  0x65   : > { %2093 = vmatprep.mubr.msk.bf16.mxu0 %vm509_vm0, %v376_v42  ;;  %2189 = vmatprep.mubr.msk.bf16.mxu1 %vm509_vm0, %v424_v43  ;;  %v323_v42 = vld [vmem:[%s2456_s7 + $0x4b0] sm:$0xff]  ;;  %v324_v43 = vld [vmem:[%s2456_s7 + $0x4b8] sm:$0xff]  ;;  %v387_v48 = vpack.c.bf16 %v228_v41, %v227_v40  ;;  %v249_v40 = vld [vmem:[%s2456_s7 + $0x260] sm:$0xff] }
  0x66   : > { %v435_v49 = vpack.c.bf16 %v324_v43, %v323_v42  ;;  %v250_v41 = vld [vmem:[%s2456_s7 + $0x268] sm:$0xff]  ;;  %v345_v42 = vld [vmem:[%s2456_s7 + $0x560] sm:$0xff] }
  0x67   : > { %v346_v43 = vld [vmem:[%s2456_s7 + $0x568] sm:$0xff]  ;;  %v398_v46 = vpack.c.bf16 %v250_v41, %v249_v40 }
  0x68   : > { %v446_v47 = vpack.c.bf16 %v346_v43, %v345_v42 }
  0x6c   : > { %2094 = vmatmul.mubr.msk.bf16.gmra.mxu0 %vm509_vm0, %v377_v52  ;;  %2190 = vmatmul.mubr.msk.bf16.gmra.mxu1 %vm509_vm0, %v425_v53  ;;  %v231_v52 = vld [vmem:[%s2456_s7 + $0x1d0] sm:$0xff]  ;;  %v232_v53 = vld [vmem:[%s2456_s7 + $0x1d8] sm:$0xff] }
  0x6d   : > { %2097 = vmatprep.mubr.msk.bf16.mxu0 %vm509_vm0, %v378_v54  ;;  %2193 = vmatprep.mubr.msk.bf16.mxu1 %vm509_vm0, %v426_v55  ;;  %v327_v54 = vld [vmem:[%s2456_s7 + $0x4d0] sm:$0xff]  ;;  %v328_v55 = vld [vmem:[%s2456_s7 + $0x4d8] sm:$0xff]  ;;  %v389_v60 = vpack.c.bf16 %v232_v53, %v231_v52  ;;  %v253_v52 = vld [vmem:[%s2456_s7 + $0x280] sm:$0xff] }
  0x6e   : > { %v437_v61 = vpack.c.bf16 %v328_v55, %v327_v54  ;;  %v254_v53 = vld [vmem:[%s2456_s7 + $0x288] sm:$0xff]  ;;  %v349_v54 = vld [vmem:[%s2456_s7 + $0x580] sm:$0xff] }
  0x6f   : > { %v350_v55 = vld [vmem:[%s2456_s7 + $0x588] sm:$0xff]  ;;  %v400_v58 = vpack.c.bf16 %v254_v53, %v253_v52 }
  0x70   : > { %v448_v59 = vpack.c.bf16 %v350_v55, %v349_v54 }
  0x74   : > { %2098 = vmatmul.mubr.msk.bf16.gmra.mxu0 %vm509_vm0, %v379_v0  ;;  %2194 = vmatmul.mubr.msk.bf16.gmra.mxu1 %vm509_vm0, %v427_v1  ;;  %v235_v0 = vld [vmem:[%s2456_s7 + $0x1f0] sm:$0xff]  ;;  %v236_v1 = vld [vmem:[%s2456_s7 + $0x1f8] sm:$0xff] }
  0x75   : > { %2101 = vmatprep.mubr.msk.bf16.mxu0 %vm509_vm0, %v380_v2  ;;  %2197 = vmatprep.mubr.msk.bf16.mxu1 %vm509_vm0, %v428_v3  ;;  %v331_v2 = vld [vmem:[%s2456_s7 + $0x4f0] sm:$0xff]  ;;  %v332_v3 = vld [vmem:[%s2456_s7 + $0x4f8] sm:$0xff]  ;;  %v391_v8 = vpack.c.bf16 %v236_v1, %v235_v0  ;;  %v257_v0 = vld [vmem:[%s2456_s7 + $0x2a0] sm:$0xff] }
  0x76   : > { %v439_v9 = vpack.c.bf16 %v332_v3, %v331_v2  ;;  %v258_v1 = vld [vmem:[%s2456_s7 + $0x2a8] sm:$0xff]  ;;  %v353_v2 = vld [vmem:[%s2456_s7 + $0x5a0] sm:$0xff] }
  0x77   : > { %v354_v3 = vld [vmem:[%s2456_s7 + $0x5a8] sm:$0xff]  ;;  %v402_v6 = vpack.c.bf16 %v258_v1, %v257_v0 }
  0x78   : > { %v450_v7 = vpack.c.bf16 %v354_v3, %v353_v2 }
  0x7c   : > { %2102 = vmatmul.mubr.msk.bf16.gmra.mxu0 %vm509_vm0, %v381_v12  ;;  %2198 = vmatmul.mubr.msk.bf16.gmra.mxu1 %vm509_vm0, %v429_v13  ;;  %v239_v12 = vld [vmem:[%s2456_s7 + $0x210] sm:$0xff]  ;;  %v240_v13 = vld [vmem:[%s2456_s7 + $0x218] sm:$0xff] }
  0x7d   : > { %2105 = vmatprep.mubr.msk.bf16.mxu0 %vm509_vm0, %v382_v14  ;;  %2201 = vmatprep.mubr.msk.bf16.mxu1 %vm509_vm0, %v430_v15  ;;  %v335_v14 = vld [vmem:[%s2456_s7 + $0x510] sm:$0xff]  ;;  %v336_v15 = vld [vmem:[%s2456_s7 + $0x518] sm:$0xff]  ;;  %v393_v20 = vpack.c.bf16 %v240_v13, %v239_v12  ;;  %v261_v12 = vld [vmem:[%s2456_s7 + $0x2c0] sm:$0xff] }
  0x7e   : > { %v441_v21 = vpack.c.bf16 %v336_v15, %v335_v14  ;;  %v262_v13 = vld [vmem:[%s2456_s7 + $0x2c8] sm:$0xff]  ;;  %v357_v14 = vld [vmem:[%s2456_s7 + $0x5c0] sm:$0xff] }
  0x7f   : > { %v358_v15 = vld [vmem:[%s2456_s7 + $0x5c8] sm:$0xff]  ;;  %v404_v18 = vpack.c.bf16 %v262_v13, %v261_v12 }
  0x80   : > { %v452_v19 = vpack.c.bf16 %v358_v15, %v357_v14 }
  0x84   : > { %2106 = vmatmul.mubr.msk.bf16.gmra.mxu0 %vm509_vm0, %v383_v24  ;;  %2202 = vmatmul.mubr.msk.bf16.gmra.mxu1 %vm509_vm0, %v431_v25  ;;  %v243_v24 = vld [vmem:[%s2456_s7 + $0x230] sm:$0xff]  ;;  %v244_v25 = vld [vmem:[%s2456_s7 + $0x238] sm:$0xff] }
  0x85   : > { %2109 = vmatprep.mubr.msk.bf16.mxu0 %vm509_vm0, %v384_v26  ;;  %2205 = vmatprep.mubr.msk.bf16.mxu1 %vm509_vm0, %v432_v27  ;;  %v339_v26 = vld [vmem:[%s2456_s7 + $0x530] sm:$0xff]  ;;  %v340_v27 = vld [vmem:[%s2456_s7 + $0x538] sm:$0xff]  ;;  %v395_v32 = vpack.c.bf16 %v244_v25, %v243_v24  ;;  %v266_v24 = vld [vmem:[%s2456_s7 + $0x2e8] sm:$0xff] }
  0x86   : > { %v443_v33 = vpack.c.bf16 %v340_v27, %v339_v26 }
  0x8c   : > { %2110 = vmatmul.mubr.msk.bf16.gmra.mxu0 %vm509_vm0, %v385_v36  ;;  %2206 = vmatmul.mubr.msk.bf16.gmra.mxu1 %vm509_vm0, %v433_v37  ;;  %v247_v36 = vld [vmem:[%s2456_s7 + $0x250] sm:$0xff]  ;;  %v248_v37 = vld [vmem:[%s2456_s7 + $0x258] sm:$0xff] }
  0x8d   : > { %2113 = vmatprep.mubr.msk.bf16.mxu0 %vm509_vm0, %v386_v38  ;;  %2209 = vmatprep.mubr.msk.bf16.mxu1 %vm509_vm0, %v434_v39  ;;  %v343_v38 = vld [vmem:[%s2456_s7 + $0x550] sm:$0xff]  ;;  %v344_v39 = vld [vmem:[%s2456_s7 + $0x558] sm:$0xff]  ;;  %v397_v44 = vpack.c.bf16 %v248_v37, %v247_v36 }
  0x8e   : > { %v445_v45 = vpack.c.bf16 %v344_v39, %v343_v38 }
  0x94   : > { %2114 = vmatmul.mubr.msk.bf16.gmra.mxu0 %vm509_vm0, %v387_v48  ;;  %2210 = vmatmul.mubr.msk.bf16.gmra.mxu1 %vm509_vm0, %v435_v49  ;;  %v251_v48 = vld [vmem:[%s2456_s7 + $0x270] sm:$0xff]  ;;  %v252_v49 = vld [vmem:[%s2456_s7 + $0x278] sm:$0xff] }
  0x95   : > { %2117 = vmatprep.mubr.msk.bf16.mxu0 %vm509_vm0, %v388_v50  ;;  %2213 = vmatprep.mubr.msk.bf16.mxu1 %vm509_vm0, %v436_v51  ;;  %v347_v50 = vld [vmem:[%s2456_s7 + $0x570] sm:$0xff]  ;;  %v348_v51 = vld [vmem:[%s2456_s7 + $0x578] sm:$0xff]  ;;  %v399_v56 = vpack.c.bf16 %v252_v49, %v251_v48 }
  0x96   : > { %v447_v57 = vpack.c.bf16 %v348_v51, %v347_v50 }
  0x9c   : > { %2118 = vmatmul.mubr.msk.bf16.gmra.mxu0 %vm509_vm0, %v389_v60  ;;  %2214 = vmatmul.mubr.msk.bf16.gmra.mxu1 %vm509_vm0, %v437_v61  ;;  %v255_v60 = vld [vmem:[%s2456_s7 + $0x290] sm:$0xff]  ;;  %v256_v61 = vld [vmem:[%s2456_s7 + $0x298] sm:$0xff] }
  0x9d   : > { %2121 = vmatprep.mubr.msk.bf16.mxu0 %vm509_vm0, %v390_v62  ;;  %2217 = vmatprep.mubr.msk.bf16.mxu1 %vm509_vm0, %v438_v63  ;;  %v351_v62 = vld [vmem:[%s2456_s7 + $0x590] sm:$0xff]  ;;  %v352_v63 = vld [vmem:[%s2456_s7 + $0x598] sm:$0xff]  ;;  %v401_v4 = vpack.c.bf16 %v256_v61, %v255_v60 }
  0x9e   : > { %v449_v5 = vpack.c.bf16 %v352_v63, %v351_v62 }
  0xa4   : > { %2122 = vmatmul.mubr.msk.bf16.gmra.mxu0 %vm509_vm0, %v391_v8  ;;  %2218 = vmatmul.mubr.msk.bf16.gmra.mxu1 %vm509_vm0, %v439_v9  ;;  %v259_v8 = vld [vmem:[%s2456_s7 + $0x2b0] sm:$0xff]  ;;  %v260_v9 = vld [vmem:[%s2456_s7 + $0x2b8] sm:$0xff] }
  0xa5   : > { %2125 = vmatprep.mubr.msk.bf16.mxu0 %vm509_vm0, %v392_v10  ;;  %2221 = vmatprep.mubr.msk.bf16.mxu1 %vm509_vm0, %v440_v11  ;;  %v355_v10 = vld [vmem:[%s2456_s7 + $0x5b0] sm:$0xff]  ;;  %v356_v11 = vld [vmem:[%s2456_s7 + $0x5b8] sm:$0xff]  ;;  %v403_v16 = vpack.c.bf16 %v260_v9, %v259_v8 }
  0xa6   : > { %v451_v17 = vpack.c.bf16 %v356_v11, %v355_v10 }
  0xac   : > { %2126 = vmatmul.mubr.msk.bf16.gmra.mxu0 %vm509_vm0, %v393_v20  ;;  %2222 = vmatmul.mubr.msk.bf16.gmra.mxu1 %vm509_vm0, %v441_v21  ;;  %v263_v20 = vld [vmem:[%s2456_s7 + $0x2d0] sm:$0xff]  ;;  %v264_v21 = vld [vmem:[%s2456_s7 + $0x2d8] sm:$0xff] }
  0xad   : > { %2129 = vmatprep.mubr.msk.bf16.mxu0 %vm509_vm0, %v394_v22  ;;  %2225 = vmatprep.mubr.msk.bf16.mxu1 %vm509_vm0, %v442_v23  ;;  %v359_v22 = vld [vmem:[%s2456_s7 + $0x5d0] sm:$0xff]  ;;  %v265_v23 = vld [vmem:[%s2456_s7 + $0x2e0] sm:$0xff]  ;;  %v405_v25 = vpack.c.bf16 %v264_v21, %v263_v20  ;;  %s3121_s7 = scalar_lea.hbm %s3172_s3, %s1948_s30 }
  0xae   : > { %v453_v26 = vpack.c.bf16 %v359_v22, %v359_v22  ;;  %v406_v27 = vpack.c.bf16 %v266_v24, %v265_v23 }
  0xb4   : > { %2130 = vmatmul.mubr.msk.bf16.gmra.mxu0 %vm509_vm0, %v395_v32  ;;  %2226 = vmatmul.mubr.msk.bf16.gmra.mxu1 %vm509_vm0, %v443_v33 }
  0xb5   : > { %2133 = vmatprep.mubr.msk.bf16.mxu0 %vm509_vm0, %v396_v34  ;;  %2229 = vmatprep.mubr.msk.bf16.mxu1 %vm509_vm0, %v444_v35 }
  0xbc   : > { %2134 = vmatmul.mubr.msk.bf16.gmra.mxu0 %vm509_vm0, %v397_v44  ;;  %2230 = vmatmul.mubr.msk.bf16.gmra.mxu1 %vm509_vm0, %v445_v45 }
  0xbd   : > { %2137 = vmatprep.mubr.msk.bf16.mxu0 %vm509_vm0, %v398_v46  ;;  %2233 = vmatprep.mubr.msk.bf16.mxu1 %vm509_vm0, %v446_v47 }
  0xc4   : > { %2138 = vmatmul.mubr.msk.bf16.gmra.mxu0 %vm509_vm0, %v399_v56  ;;  %2234 = vmatmul.mubr.msk.bf16.gmra.mxu1 %vm509_vm0, %v447_v57 }
  0xc5   : > { %2141 = vmatprep.mubr.msk.bf16.mxu0 %vm509_vm0, %v400_v58  ;;  %2237 = vmatprep.mubr.msk.bf16.mxu1 %vm509_vm0, %v448_v59 }
  0xcc   : > { %2142 = vmatmul.mubr.msk.bf16.gmra.mxu0 %vm509_vm0, %v401_v4  ;;  %2238 = vmatmul.mubr.msk.bf16.gmra.mxu1 %vm509_vm0, %v449_v5 }
  0xcd   : > { %2145 = vmatprep.mubr.msk.bf16.mxu0 %vm509_vm0, %v402_v6  ;;  %2241 = vmatprep.mubr.msk.bf16.mxu1 %vm509_vm0, %v450_v7 }
  0xd4   : > { %2146 = vmatmul.mubr.msk.bf16.gmra.mxu0 %vm509_vm0, %v403_v16  ;;  %2242 = vmatmul.mubr.msk.bf16.gmra.mxu1 %vm509_vm0, %v451_v17 }
  0xd5   : > { %2149 = vmatprep.mubr.msk.bf16.mxu0 %vm509_vm0, %v404_v18  ;;  %2245 = vmatprep.mubr.msk.bf16.mxu1 %vm509_vm0, %v452_v19 }
  0xdc   : > { %2150 = vmatmul.mubr.msk.bf16.gmra.mxu0 %vm509_vm0, %v405_v25  ;;  %2246 = vmatmul.mubr.msk.bf16.gmra.mxu1 %vm509_vm0, %v453_v26 }
  0xdd   : > { %2153 = vmatprep.mubr.msk.bf16.mxu0 %vm509_vm0, %v406_v27 }
  0xe4   : > { %2154 = vmatmul.mubr.msk.bf16.gmra.mxu0 %vm509_vm0, %v407_v30 }
  0xec   : > { %v2063_v32 = vpop.f32.mrf.mxu0  ;;  %v2159_v33 = vpop.f32.mrf.mxu1 }
  0xed   : > { %v835_v34 = vadd.f32 %v2063_v32, %v2754_v31  ;;  %v1219_v35 = vadd.f32 %v2159_v33, %v2754_v31 }
  0xee   : > { %v826_v36 = vpop.f32.mrf.mxu0  ;;  %v1210_v37 = vpop.f32.mrf.mxu1 }
  0xef   : > { %1578 = vst [vmem:[%s2758_s27 + $0x10] sm:$0xff] %v835_v34  ;;  %v827_v38 = vadd.f32 %v2754_v31, %v826_v36  ;;  %1674 = vst [vmem:[%s2758_s27 + $0x310] sm:$0xff] %v1219_v35  ;;  %v1211_v39 = vadd.f32 %v2754_v31, %v1210_v37 }
  0xf0   : > { %v2064_v40 = vpop.f32.mrf.mxu0  ;;  %v2160_v41 = vpop.f32.mrf.mxu1 }
  0xf1   : > { %1576 = vst [vmem:[%s2758_s27] sm:$0xff] %v827_v38  ;;  %v838_v42 = vadd.f32 %v2064_v40, %v2754_v31  ;;  %1672 = vst [vmem:[%s2758_s27 + $0x300] sm:$0xff] %v1211_v39  ;;  %v1222_v43 = vadd.f32 %v2160_v41, %v2754_v31 }
  0xf2   : > { %v829_v44 = vpop.f32.mrf.mxu0  ;;  %v1213_v45 = vpop.f32.mrf.mxu1 }
  0xf3   : > { %1579 = vst [vmem:[%s2758_s27 + $0x18] sm:$0xff] %v838_v42  ;;  %v830_v46 = vadd.f32 %v2754_v31, %v829_v44  ;;  %1675 = vst [vmem:[%s2758_s27 + $0x318] sm:$0xff] %v1222_v43  ;;  %v1214_v47 = vadd.f32 %v2754_v31, %v1213_v45 }
  0xf4   : > { %v2067_v48 = vpop.f32.mrf.mxu0  ;;  %v2163_v49 = vpop.f32.mrf.mxu1 }
  0xf5   : > { %1577 = vst [vmem:[%s2758_s27 + $0x8] sm:$0xff] %v830_v46  ;;  %v851_v50 = vadd.f32 %v2067_v48, %v2754_v31  ;;  %1673 = vst [vmem:[%s2758_s27 + $0x308] sm:$0xff] %v1214_v47  ;;  %v1235_v51 = vadd.f32 %v2163_v49, %v2754_v31 }
  0xf6   : > { %v842_v52 = vpop.f32.mrf.mxu0  ;;  %v1226_v53 = vpop.f32.mrf.mxu1 }
  0xf7   : > { %1582 = vst [vmem:[%s2758_s27 + $0x30] sm:$0xff] %v851_v50  ;;  %v843_v54 = vadd.f32 %v2754_v31, %v842_v52  ;;  %1678 = vst [vmem:[%s2758_s27 + $0x330] sm:$0xff] %v1235_v51  ;;  %v1227_v55 = vadd.f32 %v2754_v31, %v1226_v53 }
  0xf8   : > { %v2068_v56 = vpop.f32.mrf.mxu0  ;;  %v2164_v57 = vpop.f32.mrf.mxu1 }
  0xf9   : > { %1580 = vst [vmem:[%s2758_s27 + $0x20] sm:$0xff] %v843_v54  ;;  %v854_v58 = vadd.f32 %v2068_v56, %v2754_v31  ;;  %1676 = vst [vmem:[%s2758_s27 + $0x320] sm:$0xff] %v1227_v55  ;;  %v1238_v59 = vadd.f32 %v2164_v57, %v2754_v31 }
  0xfa   : > { %v845_v60 = vpop.f32.mrf.mxu0  ;;  %v1229_v61 = vpop.f32.mrf.mxu1 }
  0xfb   : > { %1583 = vst [vmem:[%s2758_s27 + $0x38] sm:$0xff] %v854_v58  ;;  %v846_v62 = vadd.f32 %v2754_v31, %v845_v60  ;;  %1679 = vst [vmem:[%s2758_s27 + $0x338] sm:$0xff] %v1238_v59  ;;  %v1230_v63 = vadd.f32 %v2754_v31, %v1229_v61 }
  0xfc   : > { %v2071_v0 = vpop.f32.mrf.mxu0  ;;  %v2167_v1 = vpop.f32.mrf.mxu1 }
  0xfd   : > { %1581 = vst [vmem:[%s2758_s27 + $0x28] sm:$0xff] %v846_v62  ;;  %v867_v2 = vadd.f32 %v2071_v0, %v2754_v31  ;;  %1677 = vst [vmem:[%s2758_s27 + $0x328] sm:$0xff] %v1230_v63  ;;  %v1251_v3 = vadd.f32 %v2167_v1, %v2754_v31 }
  0xfe   : > { %v858_v4 = vpop.f32.mrf.mxu0  ;;  %v1242_v5 = vpop.f32.mrf.mxu1 }
  0xff   : > { %1586 = vst [vmem:[%s2758_s27 + $0x50] sm:$0xff] %v867_v2  ;;  %v859_v6 = vadd.f32 %v2754_v31, %v858_v4  ;;  %1682 = vst [vmem:[%s2758_s27 + $0x350] sm:$0xff] %v1251_v3  ;;  %v1243_v7 = vadd.f32 %v2754_v31, %v1242_v5 }
 0x100   : > { %v2072_v8 = vpop.f32.mrf.mxu0  ;;  %v2168_v9 = vpop.f32.mrf.mxu1 }
 0x101   : > { %1584 = vst [vmem:[%s2758_s27 + $0x40] sm:$0xff] %v859_v6  ;;  %v870_v10 = vadd.f32 %v2072_v8, %v2754_v31  ;;  %1680 = vst [vmem:[%s2758_s27 + $0x340] sm:$0xff] %v1243_v7  ;;  %v1254_v11 = vadd.f32 %v2168_v9, %v2754_v31 }
 0x102   : > { %v861_v12 = vpop.f32.mrf.mxu0  ;;  %v1245_v13 = vpop.f32.mrf.mxu1 }
 0x103   : > { %1587 = vst [vmem:[%s2758_s27 + $0x58] sm:$0xff] %v870_v10  ;;  %v862_v14 = vadd.f32 %v2754_v31, %v861_v12  ;;  %1683 = vst [vmem:[%s2758_s27 + $0x358] sm:$0xff] %v1254_v11  ;;  %v1246_v15 = vadd.f32 %v2754_v31, %v1245_v13 }
 0x104   : > { %v2075_v16 = vpop.f32.mrf.mxu0  ;;  %v2171_v17 = vpop.f32.mrf.mxu1 }
 0x105   : > { %1585 = vst [vmem:[%s2758_s27 + $0x48] sm:$0xff] %v862_v14  ;;  %v883_v18 = vadd.f32 %v2075_v16, %v2754_v31  ;;  %1681 = vst [vmem:[%s2758_s27 + $0x348] sm:$0xff] %v1246_v15  ;;  %v1267_v19 = vadd.f32 %v2171_v17, %v2754_v31 }
 0x106   : > { %v874_v20 = vpop.f32.mrf.mxu0  ;;  %v1258_v21 = vpop.f32.mrf.mxu1 }
 0x107   : > { %1590 = vst [vmem:[%s2758_s27 + $0x70] sm:$0xff] %v883_v18  ;;  %v875_v22 = vadd.f32 %v2754_v31, %v874_v20  ;;  %1686 = vst [vmem:[%s2758_s27 + $0x370] sm:$0xff] %v1267_v19  ;;  %v1259_v23 = vadd.f32 %v2754_v31, %v1258_v21 }
 0x108   : > { %v2076_v24 = vpop.f32.mrf.mxu0  ;;  %v2172_v25 = vpop.f32.mrf.mxu1 }
 0x109   : > { %1588 = vst [vmem:[%s2758_s27 + $0x60] sm:$0xff] %v875_v22  ;;  %v886_v26 = vadd.f32 %v2076_v24, %v2754_v31  ;;  %1684 = vst [vmem:[%s2758_s27 + $0x360] sm:$0xff] %v1259_v23  ;;  %v1270_v27 = vadd.f32 %v2172_v25, %v2754_v31 }
 0x10a   : > { %v877_v28 = vpop.f32.mrf.mxu0  ;;  %v1261_v29 = vpop.f32.mrf.mxu1 }
 0x10b   : > { %1591 = vst [vmem:[%s2758_s27 + $0x78] sm:$0xff] %v886_v26  ;;  %v878_v30 = vadd.f32 %v2754_v31, %v877_v28  ;;  %1687 = vst [vmem:[%s2758_s27 + $0x378] sm:$0xff] %v1270_v27  ;;  %v1262_v32 = vadd.f32 %v2754_v31, %v1261_v29 }
 0x10c   : > { %v2079_v33 = vpop.f32.mrf.mxu0  ;;  %v2175_v34 = vpop.f32.mrf.mxu1 }
 0x10d   : > { %1589 = vst [vmem:[%s2758_s27 + $0x68] sm:$0xff] %v878_v30  ;;  %v899_v35 = vadd.f32 %v2079_v33, %v2754_v31  ;;  %1685 = vst [vmem:[%s2758_s27 + $0x368] sm:$0xff] %v1262_v32  ;;  %v1283_v36 = vadd.f32 %v2175_v34, %v2754_v31 }
 0x10e   : > { %v890_v37 = vpop.f32.mrf.mxu0  ;;  %v1274_v38 = vpop.f32.mrf.mxu1 }
 0x10f   : > { %1594 = vst [vmem:[%s2758_s27 + $0x90] sm:$0xff] %v899_v35  ;;  %v891_v39 = vadd.f32 %v2754_v31, %v890_v37  ;;  %1690 = vst [vmem:[%s2758_s27 + $0x390] sm:$0xff] %v1283_v36  ;;  %v1275_v40 = vadd.f32 %v2754_v31, %v1274_v38 }
 0x110   : > { %v2080_v41 = vpop.f32.mrf.mxu0  ;;  %v2176_v42 = vpop.f32.mrf.mxu1 }
 0x111   : > { %1592 = vst [vmem:[%s2758_s27 + $0x80] sm:$0xff] %v891_v39  ;;  %v902_v43 = vadd.f32 %v2080_v41, %v2754_v31  ;;  %1688 = vst [vmem:[%s2758_s27 + $0x380] sm:$0xff] %v1275_v40  ;;  %v1286_v44 = vadd.f32 %v2176_v42, %v2754_v31 }
 0x112   : > { %v893_v45 = vpop.f32.mrf.mxu0  ;;  %v1277_v46 = vpop.f32.mrf.mxu1 }
 0x113   : > { %1595 = vst [vmem:[%s2758_s27 + $0x98] sm:$0xff] %v902_v43  ;;  %v894_v47 = vadd.f32 %v2754_v31, %v893_v45  ;;  %1691 = vst [vmem:[%s2758_s27 + $0x398] sm:$0xff] %v1286_v44  ;;  %v1278_v48 = vadd.f32 %v2754_v31, %v1277_v46 }
 0x114   : > { %v2083_v49 = vpop.f32.mrf.mxu0  ;;  %v2179_v50 = vpop.f32.mrf.mxu1 }
 0x115   : > { %1593 = vst [vmem:[%s2758_s27 + $0x88] sm:$0xff] %v894_v47  ;;  %v915_v51 = vadd.f32 %v2083_v49, %v2754_v31  ;;  %1689 = vst [vmem:[%s2758_s27 + $0x388] sm:$0xff] %v1278_v48  ;;  %v1299_v52 = vadd.f32 %v2179_v50, %v2754_v31 }
 0x116   : > { %v906_v53 = vpop.f32.mrf.mxu0  ;;  %v1290_v54 = vpop.f32.mrf.mxu1 }
 0x117   : > { %1598 = vst [vmem:[%s2758_s27 + $0xb0] sm:$0xff] %v915_v51  ;;  %v907_v55 = vadd.f32 %v2754_v31, %v906_v53  ;;  %1694 = vst [vmem:[%s2758_s27 + $0x3b0] sm:$0xff] %v1299_v52  ;;  %v1291_v56 = vadd.f32 %v2754_v31, %v1290_v54 }
 0x118   : > { %v2084_v57 = vpop.f32.mrf.mxu0  ;;  %v2180_v58 = vpop.f32.mrf.mxu1 }
 0x119   : > { %1596 = vst [vmem:[%s2758_s27 + $0xa0] sm:$0xff] %v907_v55  ;;  %v918_v59 = vadd.f32 %v2084_v57, %v2754_v31  ;;  %1692 = vst [vmem:[%s2758_s27 + $0x3a0] sm:$0xff] %v1291_v56  ;;  %v1302_v60 = vadd.f32 %v2180_v58, %v2754_v31 }
 0x11a   : > { %v909_v61 = vpop.f32.mrf.mxu0  ;;  %v1293_v62 = vpop.f32.mrf.mxu1 }
 0x11b   : > { %1599 = vst [vmem:[%s2758_s27 + $0xb8] sm:$0xff] %v918_v59  ;;  %v910_v63 = vadd.f32 %v2754_v31, %v909_v61  ;;  %1695 = vst [vmem:[%s2758_s27 + $0x3b8] sm:$0xff] %v1302_v60  ;;  %v1294_v0 = vadd.f32 %v2754_v31, %v1293_v62 }
 0x11c   : > { %v2087_v1 = vpop.f32.mrf.mxu0  ;;  %v2183_v2 = vpop.f32.mrf.mxu1 }
 0x11d   : > { %1597 = vst [vmem:[%s2758_s27 + $0xa8] sm:$0xff] %v910_v63  ;;  %v931_v3 = vadd.f32 %v2087_v1, %v2754_v31  ;;  %1693 = vst [vmem:[%s2758_s27 + $0x3a8] sm:$0xff] %v1294_v0  ;;  %v1315_v4 = vadd.f32 %v2183_v2, %v2754_v31 }
 0x11e   : > { %v922_v5 = vpop.f32.mrf.mxu0  ;;  %v1306_v6 = vpop.f32.mrf.mxu1 }
 0x11f   : > { %1602 = vst [vmem:[%s2758_s27 + $0xd0] sm:$0xff] %v931_v3  ;;  %v923_v7 = vadd.f32 %v2754_v31, %v922_v5  ;;  %1698 = vst [vmem:[%s2758_s27 + $0x3d0] sm:$0xff] %v1315_v4  ;;  %v1307_v8 = vadd.f32 %v2754_v31, %v1306_v6 }
 0x120   : > { %v2088_v9 = vpop.f32.mrf.mxu0  ;;  %v2184_v10 = vpop.f32.mrf.mxu1 }
 0x121   : > { %1600 = vst [vmem:[%s2758_s27 + $0xc0] sm:$0xff] %v923_v7  ;;  %v934_v11 = vadd.f32 %v2088_v9, %v2754_v31  ;;  %1696 = vst [vmem:[%s2758_s27 + $0x3c0] sm:$0xff] %v1307_v8  ;;  %v1318_v12 = vadd.f32 %v2184_v10, %v2754_v31 }
 0x122   : > { %v925_v13 = vpop.f32.mrf.mxu0  ;;  %v1309_v14 = vpop.f32.mrf.mxu1 }
 0x123   : > { %1603 = vst [vmem:[%s2758_s27 + $0xd8] sm:$0xff] %v934_v11  ;;  %v926_v15 = vadd.f32 %v2754_v31, %v925_v13  ;;  %1699 = vst [vmem:[%s2758_s27 + $0x3d8] sm:$0xff] %v1318_v12  ;;  %v1310_v16 = vadd.f32 %v2754_v31, %v1309_v14 }
 0x124   : > { %v2091_v17 = vpop.f32.mrf.mxu0  ;;  %v2187_v18 = vpop.f32.mrf.mxu1 }
 0x125   : > { %1601 = vst [vmem:[%s2758_s27 + $0xc8] sm:$0xff] %v926_v15  ;;  %v947_v19 = vadd.f32 %v2091_v17, %v2754_v31  ;;  %1697 = vst [vmem:[%s2758_s27 + $0x3c8] sm:$0xff] %v1310_v16  ;;  %v1331_v20 = vadd.f32 %v2187_v18, %v2754_v31 }
 0x126   : > { %v938_v21 = vpop.f32.mrf.mxu0  ;;  %v1322_v22 = vpop.f32.mrf.mxu1 }
 0x127   : > { %1606 = vst [vmem:[%s2758_s27 + $0xf0] sm:$0xff] %v947_v19  ;;  %v939_v23 = vadd.f32 %v2754_v31, %v938_v21  ;;  %1702 = vst [vmem:[%s2758_s27 + $0x3f0] sm:$0xff] %v1331_v20  ;;  %v1323_v24 = vadd.f32 %v2754_v31, %v1322_v22 }
 0x128   : > { %v2092_v25 = vpop.f32.mrf.mxu0  ;;  %v2188_v26 = vpop.f32.mrf.mxu1 }
 0x129   : > { %1604 = vst [vmem:[%s2758_s27 + $0xe0] sm:$0xff] %v939_v23  ;;  %v950_v27 = vadd.f32 %v2092_v25, %v2754_v31  ;;  %1700 = vst [vmem:[%s2758_s27 + $0x3e0] sm:$0xff] %v1323_v24  ;;  %v1334_v28 = vadd.f32 %v2188_v26, %v2754_v31 }
 0x12a   : > { %v941_v29 = vpop.f32.mrf.mxu0  ;;  %v1325_v30 = vpop.f32.mrf.mxu1 }
 0x12b   : > { %1607 = vst [vmem:[%s2758_s27 + $0xf8] sm:$0xff] %v950_v27  ;;  %v942_v32 = vadd.f32 %v2754_v31, %v941_v29  ;;  %1703 = vst [vmem:[%s2758_s27 + $0x3f8] sm:$0xff] %v1334_v28  ;;  %v1326_v33 = vadd.f32 %v2754_v31, %v1325_v30 }
 0x12c   : > { %v2095_v34 = vpop.f32.mrf.mxu0  ;;  %v2191_v35 = vpop.f32.mrf.mxu1 }
 0x12d   : > { %1605 = vst [vmem:[%s2758_s27 + $0xe8] sm:$0xff] %v942_v32  ;;  %v963_v36 = vadd.f32 %v2095_v34, %v2754_v31  ;;  %1701 = vst [vmem:[%s2758_s27 + $0x3e8] sm:$0xff] %v1326_v33  ;;  %v1347_v37 = vadd.f32 %v2191_v35, %v2754_v31 }
 0x12e   : > { %v954_v38 = vpop.f32.mrf.mxu0  ;;  %v1338_v39 = vpop.f32.mrf.mxu1 }
 0x12f   : > { %1610 = vst [vmem:[%s2758_s27 + $0x110] sm:$0xff] %v963_v36  ;;  %v955_v40 = vadd.f32 %v2754_v31, %v954_v38  ;;  %1706 = vst [vmem:[%s2758_s27 + $0x410] sm:$0xff] %v1347_v37  ;;  %v1339_v41 = vadd.f32 %v2754_v31, %v1338_v39 }
 0x130   : > { %v2096_v42 = vpop.f32.mrf.mxu0  ;;  %v2192_v43 = vpop.f32.mrf.mxu1 }
 0x131   : > { %1608 = vst [vmem:[%s2758_s27 + $0x100] sm:$0xff] %v955_v40  ;;  %v966_v44 = vadd.f32 %v2096_v42, %v2754_v31  ;;  %1704 = vst [vmem:[%s2758_s27 + $0x400] sm:$0xff] %v1339_v41  ;;  %v1350_v45 = vadd.f32 %v2192_v43, %v2754_v31 }
 0x132   : > { %v957_v46 = vpop.f32.mrf.mxu0  ;;  %v1341_v47 = vpop.f32.mrf.mxu1 }
 0x133   : > { %1611 = vst [vmem:[%s2758_s27 + $0x118] sm:$0xff] %v966_v44  ;;  %v958_v48 = vadd.f32 %v2754_v31, %v957_v46  ;;  %1707 = vst [vmem:[%s2758_s27 + $0x418] sm:$0xff] %v1350_v45  ;;  %v1342_v49 = vadd.f32 %v2754_v31, %v1341_v47 }
 0x134   : > { %v2099_v50 = vpop.f32.mrf.mxu0  ;;  %v2195_v51 = vpop.f32.mrf.mxu1 }
 0x135   : > { %1609 = vst [vmem:[%s2758_s27 + $0x108] sm:$0xff] %v958_v48  ;;  %v979_v52 = vadd.f32 %v2099_v50, %v2754_v31  ;;  %1705 = vst [vmem:[%s2758_s27 + $0x408] sm:$0xff] %v1342_v49  ;;  %v1363_v53 = vadd.f32 %v2195_v51, %v2754_v31 }
 0x136   : > { %v970_v54 = vpop.f32.mrf.mxu0  ;;  %v1354_v55 = vpop.f32.mrf.mxu1 }
 0x137   : > { %1614 = vst [vmem:[%s2758_s27 + $0x130] sm:$0xff] %v979_v52  ;;  %v971_v56 = vadd.f32 %v2754_v31, %v970_v54  ;;  %1710 = vst [vmem:[%s2758_s27 + $0x430] sm:$0xff] %v1363_v53  ;;  %v1355_v57 = vadd.f32 %v2754_v31, %v1354_v55 }
 0x138   : > { %v2100_v58 = vpop.f32.mrf.mxu0  ;;  %v2196_v59 = vpop.f32.mrf.mxu1 }
 0x139   : > { %1612 = vst [vmem:[%s2758_s27 + $0x120] sm:$0xff] %v971_v56  ;;  %v982_v60 = vadd.f32 %v2100_v58, %v2754_v31  ;;  %1708 = vst [vmem:[%s2758_s27 + $0x420] sm:$0xff] %v1355_v57  ;;  %v1366_v61 = vadd.f32 %v2196_v59, %v2754_v31 }
 0x13a   : > { %v973_v62 = vpop.f32.mrf.mxu0  ;;  %v1357_v63 = vpop.f32.mrf.mxu1 }
 0x13b   : > { %1615 = vst [vmem:[%s2758_s27 + $0x138] sm:$0xff] %v982_v60  ;;  %v974_v0 = vadd.f32 %v2754_v31, %v973_v62  ;;  %1711 = vst [vmem:[%s2758_s27 + $0x438] sm:$0xff] %v1366_v61  ;;  %v1358_v1 = vadd.f32 %v2754_v31, %v1357_v63 }
 0x13c   : > { %v2103_v2 = vpop.f32.mrf.mxu0  ;;  %v2199_v3 = vpop.f32.mrf.mxu1 }
 0x13d   : > { %1613 = vst [vmem:[%s2758_s27 + $0x128] sm:$0xff] %v974_v0  ;;  %v995_v4 = vadd.f32 %v2103_v2, %v2754_v31  ;;  %1709 = vst [vmem:[%s2758_s27 + $0x428] sm:$0xff] %v1358_v1  ;;  %v1379_v5 = vadd.f32 %v2199_v3, %v2754_v31 }
 0x13e   : > { %v986_v6 = vpop.f32.mrf.mxu0  ;;  %v1370_v7 = vpop.f32.mrf.mxu1 }
 0x13f   : > { %1618 = vst [vmem:[%s2758_s27 + $0x150] sm:$0xff] %v995_v4  ;;  %v987_v8 = vadd.f32 %v2754_v31, %v986_v6  ;;  %1714 = vst [vmem:[%s2758_s27 + $0x450] sm:$0xff] %v1379_v5  ;;  %v1371_v9 = vadd.f32 %v2754_v31, %v1370_v7 }
 0x140   : > { %v2104_v10 = vpop.f32.mrf.mxu0  ;;  %v2200_v11 = vpop.f32.mrf.mxu1 }
 0x141   : > { %1616 = vst [vmem:[%s2758_s27 + $0x140] sm:$0xff] %v987_v8  ;;  %v998_v12 = vadd.f32 %v2104_v10, %v2754_v31  ;;  %1712 = vst [vmem:[%s2758_s27 + $0x440] sm:$0xff] %v1371_v9  ;;  %v1382_v13 = vadd.f32 %v2200_v11, %v2754_v31 }
 0x142   : > { %v989_v14 = vpop.f32.mrf.mxu0  ;;  %v1373_v15 = vpop.f32.mrf.mxu1 }
 0x143   : > { %1619 = vst [vmem:[%s2758_s27 + $0x158] sm:$0xff] %v998_v12  ;;  %v990_v16 = vadd.f32 %v2754_v31, %v989_v14  ;;  %1715 = vst [vmem:[%s2758_s27 + $0x458] sm:$0xff] %v1382_v13  ;;  %v1374_v17 = vadd.f32 %v2754_v31, %v1373_v15 }
 0x144   : > { %v2107_v18 = vpop.f32.mrf.mxu0  ;;  %v2203_v19 = vpop.f32.mrf.mxu1 }
 0x145   : > { %1617 = vst [vmem:[%s2758_s27 + $0x148] sm:$0xff] %v990_v16  ;;  %v1011_v20 = vadd.f32 %v2107_v18, %v2754_v31  ;;  %1713 = vst [vmem:[%s2758_s27 + $0x448] sm:$0xff] %v1374_v17  ;;  %v1395_v21 = vadd.f32 %v2203_v19, %v2754_v31 }
 0x146   : > { %v1002_v22 = vpop.f32.mrf.mxu0  ;;  %v1386_v23 = vpop.f32.mrf.mxu1 }
 0x147   : > { %1622 = vst [vmem:[%s2758_s27 + $0x170] sm:$0xff] %v1011_v20  ;;  %v1003_v24 = vadd.f32 %v2754_v31, %v1002_v22  ;;  %1718 = vst [vmem:[%s2758_s27 + $0x470] sm:$0xff] %v1395_v21  ;;  %v1387_v25 = vadd.f32 %v2754_v31, %v1386_v23 }
 0x148   : > { %v2108_v26 = vpop.f32.mrf.mxu0  ;;  %v2204_v27 = vpop.f32.mrf.mxu1 }
 0x149   : > { %1620 = vst [vmem:[%s2758_s27 + $0x160] sm:$0xff] %v1003_v24  ;;  %v1014_v28 = vadd.f32 %v2108_v26, %v2754_v31  ;;  %1716 = vst [vmem:[%s2758_s27 + $0x460] sm:$0xff] %v1387_v25  ;;  %v1398_v29 = vadd.f32 %v2204_v27, %v2754_v31 }
 0x14a   : > { %v1005_v30 = vpop.f32.mrf.mxu0  ;;  %v1389_v32 = vpop.f32.mrf.mxu1 }
 0x14b   : > { %1623 = vst [vmem:[%s2758_s27 + $0x178] sm:$0xff] %v1014_v28  ;;  %v1006_v33 = vadd.f32 %v2754_v31, %v1005_v30  ;;  %1719 = vst [vmem:[%s2758_s27 + $0x478] sm:$0xff] %v1398_v29  ;;  %v1390_v34 = vadd.f32 %v2754_v31, %v1389_v32 }
 0x14c   : > { %v2111_v35 = vpop.f32.mrf.mxu0  ;;  %v2207_v36 = vpop.f32.mrf.mxu1 }
 0x14d   : > { %1621 = vst [vmem:[%s2758_s27 + $0x168] sm:$0xff] %v1006_v33  ;;  %v1027_v37 = vadd.f32 %v2111_v35, %v2754_v31  ;;  %1717 = vst [vmem:[%s2758_s27 + $0x468] sm:$0xff] %v1390_v34  ;;  %v1411_v38 = vadd.f32 %v2207_v36, %v2754_v31 }
 0x14e   : > { %v1018_v39 = vpop.f32.mrf.mxu0  ;;  %v1402_v40 = vpop.f32.mrf.mxu1 }
 0x14f   : > { %1626 = vst [vmem:[%s2758_s27 + $0x190] sm:$0xff] %v1027_v37  ;;  %v1019_v41 = vadd.f32 %v2754_v31, %v1018_v39  ;;  %1722 = vst [vmem:[%s2758_s27 + $0x490] sm:$0xff] %v1411_v38  ;;  %v1403_v42 = vadd.f32 %v2754_v31, %v1402_v40 }
 0x150   : > { %v2112_v43 = vpop.f32.mrf.mxu0  ;;  %v2208_v44 = vpop.f32.mrf.mxu1 }
 0x151   : > { %1624 = vst [vmem:[%s2758_s27 + $0x180] sm:$0xff] %v1019_v41  ;;  %v1030_v45 = vadd.f32 %v2112_v43, %v2754_v31  ;;  %1720 = vst [vmem:[%s2758_s27 + $0x480] sm:$0xff] %v1403_v42  ;;  %v1414_v46 = vadd.f32 %v2208_v44, %v2754_v31 }
 0x152   : > { %v1021_v47 = vpop.f32.mrf.mxu0  ;;  %v1405_v48 = vpop.f32.mrf.mxu1 }
 0x153   : > { %1627 = vst [vmem:[%s2758_s27 + $0x198] sm:$0xff] %v1030_v45  ;;  %v1022_v49 = vadd.f32 %v2754_v31, %v1021_v47  ;;  %1723 = vst [vmem:[%s2758_s27 + $0x498] sm:$0xff] %v1414_v46  ;;  %v1406_v50 = vadd.f32 %v2754_v31, %v1405_v48 }
 0x154   : > { %v2115_v51 = vpop.f32.mrf.mxu0  ;;  %v2211_v52 = vpop.f32.mrf.mxu1 }
 0x155   : > { %1625 = vst [vmem:[%s2758_s27 + $0x188] sm:$0xff] %v1022_v49  ;;  %v1043_v53 = vadd.f32 %v2115_v51, %v2754_v31  ;;  %1721 = vst [vmem:[%s2758_s27 + $0x488] sm:$0xff] %v1406_v50  ;;  %v1427_v54 = vadd.f32 %v2211_v52, %v2754_v31 }
 0x156   : > { %v1034_v55 = vpop.f32.mrf.mxu0  ;;  %v1418_v56 = vpop.f32.mrf.mxu1 }
 0x157   : > { %1630 = vst [vmem:[%s2758_s27 + $0x1b0] sm:$0xff] %v1043_v53  ;;  %v1035_v57 = vadd.f32 %v2754_v31, %v1034_v55  ;;  %1726 = vst [vmem:[%s2758_s27 + $0x4b0] sm:$0xff] %v1427_v54  ;;  %v1419_v58 = vadd.f32 %v2754_v31, %v1418_v56 }
 0x158   : > { %v2116_v59 = vpop.f32.mrf.mxu0  ;;  %v2212_v60 = vpop.f32.mrf.mxu1 }
 0x159   : > { %1628 = vst [vmem:[%s2758_s27 + $0x1a0] sm:$0xff] %v1035_v57  ;;  %v1046_v61 = vadd.f32 %v2116_v59, %v2754_v31  ;;  %1724 = vst [vmem:[%s2758_s27 + $0x4a0] sm:$0xff] %v1419_v58  ;;  %v1430_v62 = vadd.f32 %v2212_v60, %v2754_v31 }
 0x15a   : > { %v1037_v63 = vpop.f32.mrf.mxu0  ;;  %v1421_v0 = vpop.f32.mrf.mxu1 }
 0x15b   : > { %1631 = vst [vmem:[%s2758_s27 + $0x1b8] sm:$0xff] %v1046_v61  ;;  %v1038_v1 = vadd.f32 %v2754_v31, %v1037_v63  ;;  %1727 = vst [vmem:[%s2758_s27 + $0x4b8] sm:$0xff] %v1430_v62  ;;  %v1422_v2 = vadd.f32 %v2754_v31, %v1421_v0 }
 0x15c   : > { %v2119_v3 = vpop.f32.mrf.mxu0  ;;  %v2215_v4 = vpop.f32.mrf.mxu1 }
 0x15d   : > { %1629 = vst [vmem:[%s2758_s27 + $0x1a8] sm:$0xff] %v1038_v1  ;;  %v1059_v5 = vadd.f32 %v2119_v3, %v2754_v31  ;;  %1725 = vst [vmem:[%s2758_s27 + $0x4a8] sm:$0xff] %v1422_v2  ;;  %v1443_v6 = vadd.f32 %v2215_v4, %v2754_v31 }
 0x15e   : > { %v1050_v7 = vpop.f32.mrf.mxu0  ;;  %v1434_v8 = vpop.f32.mrf.mxu1 }
 0x15f   : > { %1634 = vst [vmem:[%s2758_s27 + $0x1d0] sm:$0xff] %v1059_v5  ;;  %v1051_v9 = vadd.f32 %v2754_v31, %v1050_v7  ;;  %1730 = vst [vmem:[%s2758_s27 + $0x4d0] sm:$0xff] %v1443_v6  ;;  %v1435_v10 = vadd.f32 %v2754_v31, %v1434_v8 }
 0x160   : > { %v2120_v11 = vpop.f32.mrf.mxu0  ;;  %v2216_v12 = vpop.f32.mrf.mxu1 }
 0x161   : > { %1632 = vst [vmem:[%s2758_s27 + $0x1c0] sm:$0xff] %v1051_v9  ;;  %v1062_v13 = vadd.f32 %v2120_v11, %v2754_v31  ;;  %1728 = vst [vmem:[%s2758_s27 + $0x4c0] sm:$0xff] %v1435_v10  ;;  %v1446_v14 = vadd.f32 %v2216_v12, %v2754_v31 }
 0x162   : > { %v1053_v15 = vpop.f32.mrf.mxu0  ;;  %v1437_v16 = vpop.f32.mrf.mxu1 }
 0x163   : > { %1635 = vst [vmem:[%s2758_s27 + $0x1d8] sm:$0xff] %v1062_v13  ;;  %v1054_v17 = vadd.f32 %v2754_v31, %v1053_v15  ;;  %1731 = vst [vmem:[%s2758_s27 + $0x4d8] sm:$0xff] %v1446_v14  ;;  %v1438_v18 = vadd.f32 %v2754_v31, %v1437_v16 }
 0x164   : > { %v2123_v19 = vpop.f32.mrf.mxu0  ;;  %v2219_v20 = vpop.f32.mrf.mxu1 }
 0x165   : > { %1633 = vst [vmem:[%s2758_s27 + $0x1c8] sm:$0xff] %v1054_v17  ;;  %v1075_v21 = vadd.f32 %v2123_v19, %v2754_v31  ;;  %1729 = vst [vmem:[%s2758_s27 + $0x4c8] sm:$0xff] %v1438_v18  ;;  %v1459_v22 = vadd.f32 %v2219_v20, %v2754_v31 }
 0x166   : > { %v1066_v23 = vpop.f32.mrf.mxu0  ;;  %v1450_v24 = vpop.f32.mrf.mxu1 }
 0x167   : > { %1638 = vst [vmem:[%s2758_s27 + $0x1f0] sm:$0xff] %v1075_v21  ;;  %v1067_v25 = vadd.f32 %v2754_v31, %v1066_v23  ;;  %1734 = vst [vmem:[%s2758_s27 + $0x4f0] sm:$0xff] %v1459_v22  ;;  %v1451_v26 = vadd.f32 %v2754_v31, %v1450_v24 }
 0x168   : > { %v2124_v27 = vpop.f32.mrf.mxu0  ;;  %v2220_v28 = vpop.f32.mrf.mxu1 }
 0x169   : > { %1636 = vst [vmem:[%s2758_s27 + $0x1e0] sm:$0xff] %v1067_v25  ;;  %v1078_v29 = vadd.f32 %v2124_v27, %v2754_v31  ;;  %1732 = vst [vmem:[%s2758_s27 + $0x4e0] sm:$0xff] %v1451_v26  ;;  %v1462_v30 = vadd.f32 %v2220_v28, %v2754_v31 }
 0x16a   : > { %v1069_v32 = vpop.f32.mrf.mxu0  ;;  %v1453_v33 = vpop.f32.mrf.mxu1 }
 0x16b   : > { %1639 = vst [vmem:[%s2758_s27 + $0x1f8] sm:$0xff] %v1078_v29  ;;  %v1070_v34 = vadd.f32 %v2754_v31, %v1069_v32  ;;  %1735 = vst [vmem:[%s2758_s27 + $0x4f8] sm:$0xff] %v1462_v30  ;;  %v1454_v35 = vadd.f32 %v2754_v31, %v1453_v33 }
 0x16c   : > { %v2127_v36 = vpop.f32.mrf.mxu0  ;;  %v2223_v37 = vpop.f32.mrf.mxu1 }
 0x16d   : > { %1637 = vst [vmem:[%s2758_s27 + $0x1e8] sm:$0xff] %v1070_v34  ;;  %v1091_v38 = vadd.f32 %v2127_v36, %v2754_v31  ;;  %1733 = vst [vmem:[%s2758_s27 + $0x4e8] sm:$0xff] %v1454_v35  ;;  %v1475_v39 = vadd.f32 %v2223_v37, %v2754_v31 }
 0x16e   : > { %v1082_v40 = vpop.f32.mrf.mxu0  ;;  %v1466_v41 = vpop.f32.mrf.mxu1 }
 0x16f   : > { %1642 = vst [vmem:[%s2758_s27 + $0x210] sm:$0xff] %v1091_v38  ;;  %v1083_v42 = vadd.f32 %v2754_v31, %v1082_v40  ;;  %1738 = vst [vmem:[%s2758_s27 + $0x510] sm:$0xff] %v1475_v39  ;;  %v1467_v43 = vadd.f32 %v2754_v31, %v1466_v41 }
 0x170   : > { %v2128_v44 = vpop.f32.mrf.mxu0  ;;  %v2224_v45 = vpop.f32.mrf.mxu1 }
 0x171   : > { %1640 = vst [vmem:[%s2758_s27 + $0x200] sm:$0xff] %v1083_v42  ;;  %v1094_v46 = vadd.f32 %v2128_v44, %v2754_v31  ;;  %1736 = vst [vmem:[%s2758_s27 + $0x500] sm:$0xff] %v1467_v43  ;;  %v1478_v47 = vadd.f32 %v2224_v45, %v2754_v31 }
 0x172   : > { %v1085_v48 = vpop.f32.mrf.mxu0  ;;  %v1469_v49 = vpop.f32.mrf.mxu1 }
 0x173   : > { %1643 = vst [vmem:[%s2758_s27 + $0x218] sm:$0xff] %v1094_v46  ;;  %v1086_v50 = vadd.f32 %v2754_v31, %v1085_v48  ;;  %1739 = vst [vmem:[%s2758_s27 + $0x518] sm:$0xff] %v1478_v47  ;;  %v1470_v51 = vadd.f32 %v2754_v31, %v1469_v49 }
 0x174   : > { %v2131_v52 = vpop.f32.mrf.mxu0  ;;  %v2227_v53 = vpop.f32.mrf.mxu1 }
 0x175   : > { %1641 = vst [vmem:[%s2758_s27 + $0x208] sm:$0xff] %v1086_v50  ;;  %v1107_v54 = vadd.f32 %v2131_v52, %v2754_v31  ;;  %1737 = vst [vmem:[%s2758_s27 + $0x508] sm:$0xff] %v1470_v51  ;;  %v1491_v55 = vadd.f32 %v2227_v53, %v2754_v31 }
 0x176   : > { %v1098_v56 = vpop.f32.mrf.mxu0  ;;  %v1482_v57 = vpop.f32.mrf.mxu1 }
 0x177   : > { %1646 = vst [vmem:[%s2758_s27 + $0x230] sm:$0xff] %v1107_v54  ;;  %v1099_v58 = vadd.f32 %v2754_v31, %v1098_v56  ;;  %1742 = vst [vmem:[%s2758_s27 + $0x530] sm:$0xff] %v1491_v55  ;;  %v1483_v59 = vadd.f32 %v2754_v31, %v1482_v57 }
 0x178   : > { %v2132_v60 = vpop.f32.mrf.mxu0  ;;  %v2228_v61 = vpop.f32.mrf.mxu1 }
 0x179   : > { %1644 = vst [vmem:[%s2758_s27 + $0x220] sm:$0xff] %v1099_v58  ;;  %v1110_v62 = vadd.f32 %v2132_v60, %v2754_v31  ;;  %1740 = vst [vmem:[%s2758_s27 + $0x520] sm:$0xff] %v1483_v59  ;;  %v1494_v63 = vadd.f32 %v2228_v61, %v2754_v31  ;;  %v2309_v59 = vld [vmem:[%s3171_s2] ss:$0 sm:$0xff] }
 0x17a   : > { %v1101_v0 = vpop.f32.mrf.mxu0  ;;  %v1485_v1 = vpop.f32.mrf.mxu1 }
 0x17b   : > { %1647 = vst [vmem:[%s2758_s27 + $0x238] sm:$0xff] %v1110_v62  ;;  %v1102_v2 = vadd.f32 %v2754_v31, %v1101_v0  ;;  %1743 = vst [vmem:[%s2758_s27 + $0x538] sm:$0xff] %v1494_v63  ;;  %v1486_v3 = vadd.f32 %v2754_v31, %v1485_v1 }
 0x17c   : > { %v2135_v4 = vpop.f32.mrf.mxu0  ;;  %v2231_v5 = vpop.f32.mrf.mxu1 }
 0x17d   : > { %1645 = vst [vmem:[%s2758_s27 + $0x228] sm:$0xff] %v1102_v2  ;;  %v1123_v6 = vadd.f32 %v2135_v4, %v2754_v31  ;;  %1741 = vst [vmem:[%s2758_s27 + $0x528] sm:$0xff] %v1486_v3  ;;  %v1507_v7 = vadd.f32 %v2231_v5, %v2754_v31 }
 0x17e   : > { %v1114_v8 = vpop.f32.mrf.mxu0  ;;  %v1498_v9 = vpop.f32.mrf.mxu1 }
 0x17f   : > { %1650 = vst [vmem:[%s2758_s27 + $0x250] sm:$0xff] %v1123_v6  ;;  %v1115_v10 = vadd.f32 %v2754_v31, %v1114_v8  ;;  %1746 = vst [vmem:[%s2758_s27 + $0x550] sm:$0xff] %v1507_v7  ;;  %v1499_v11 = vadd.f32 %v2754_v31, %v1498_v9 }
 0x180   : > { %v2136_v12 = vpop.f32.mrf.mxu0  ;;  %v2232_v13 = vpop.f32.mrf.mxu1 }
 0x181   : > { %1648 = vst [vmem:[%s2758_s27 + $0x240] sm:$0xff] %v1115_v10  ;;  %v1126_v14 = vadd.f32 %v2136_v12, %v2754_v31  ;;  %1744 = vst [vmem:[%s2758_s27 + $0x540] sm:$0xff] %v1499_v11  ;;  %v1510_v15 = vadd.f32 %v2232_v13, %v2754_v31 }
 0x182   : > { %v1117_v16 = vpop.f32.mrf.mxu0  ;;  %v1501_v17 = vpop.f32.mrf.mxu1 }
 0x183   : > { %1651 = vst [vmem:[%s2758_s27 + $0x258] sm:$0xff] %v1126_v14  ;;  %v1118_v18 = vadd.f32 %v2754_v31, %v1117_v16  ;;  %1747 = vst [vmem:[%s2758_s27 + $0x558] sm:$0xff] %v1510_v15  ;;  %v1502_v19 = vadd.f32 %v2754_v31, %v1501_v17 }
 0x184   : > { %v2139_v20 = vpop.f32.mrf.mxu0  ;;  %v2235_v21 = vpop.f32.mrf.mxu1 }
 0x185   : > { %1649 = vst [vmem:[%s2758_s27 + $0x248] sm:$0xff] %v1118_v18  ;;  %v1139_v22 = vadd.f32 %v2139_v20, %v2754_v31  ;;  %1745 = vst [vmem:[%s2758_s27 + $0x548] sm:$0xff] %v1502_v19  ;;  %v1523_v23 = vadd.f32 %v2235_v21, %v2754_v31 }
 0x186   : > { %v1130_v24 = vpop.f32.mrf.mxu0  ;;  %v1514_v25 = vpop.f32.mrf.mxu1 }
 0x187   : > { %1654 = vst [vmem:[%s2758_s27 + $0x270] sm:$0xff] %v1139_v22  ;;  %v1131_v26 = vadd.f32 %v2754_v31, %v1130_v24  ;;  %1750 = vst [vmem:[%s2758_s27 + $0x570] sm:$0xff] %v1523_v23  ;;  %v1515_v27 = vadd.f32 %v2754_v31, %v1514_v25 }
 0x188   : > { %v2140_v28 = vpop.f32.mrf.mxu0  ;;  %v2236_v29 = vpop.f32.mrf.mxu1 }
 0x189   : > { %1652 = vst [vmem:[%s2758_s27 + $0x260] sm:$0xff] %v1131_v26  ;;  %v1142_v30 = vadd.f32 %v2140_v28, %v2754_v31  ;;  %1748 = vst [vmem:[%s2758_s27 + $0x560] sm:$0xff] %v1515_v27  ;;  %v1526_v32 = vadd.f32 %v2236_v29, %v2754_v31 }
 0x18a   : > { %v1133_v33 = vpop.f32.mrf.mxu0  ;;  %v1517_v34 = vpop.f32.mrf.mxu1 }
 0x18b   : > { %1655 = vst [vmem:[%s2758_s27 + $0x278] sm:$0xff] %v1142_v30  ;;  %v1134_v35 = vadd.f32 %v2754_v31, %v1133_v33  ;;  %1751 = vst [vmem:[%s2758_s27 + $0x578] sm:$0xff] %v1526_v32  ;;  %v1518_v36 = vadd.f32 %v2754_v31, %v1517_v34 }
 0x18c   : > { %v2143_v37 = vpop.f32.mrf.mxu0  ;;  %v2239_v38 = vpop.f32.mrf.mxu1 }
 0x18d   : > { %1653 = vst [vmem:[%s2758_s27 + $0x268] sm:$0xff] %v1134_v35  ;;  %v1155_v39 = vadd.f32 %v2143_v37, %v2754_v31  ;;  %1749 = vst [vmem:[%s2758_s27 + $0x568] sm:$0xff] %v1518_v36  ;;  %v1539_v40 = vadd.f32 %v2239_v38, %v2754_v31 }
 0x18e   : > { %v1146_v41 = vpop.f32.mrf.mxu0  ;;  %v1530_v42 = vpop.f32.mrf.mxu1 }
 0x18f   : > { %1658 = vst [vmem:[%s2758_s27 + $0x290] sm:$0xff] %v1155_v39  ;;  %v1147_v43 = vadd.f32 %v2754_v31, %v1146_v41  ;;  %1754 = vst [vmem:[%s2758_s27 + $0x590] sm:$0xff] %v1539_v40  ;;  %v1531_v44 = vadd.f32 %v2754_v31, %v1530_v42 }
 0x190   : > { %v2144_v45 = vpop.f32.mrf.mxu0  ;;  %v2240_v46 = vpop.f32.mrf.mxu1 }
 0x191   : > { %1656 = vst [vmem:[%s2758_s27 + $0x280] sm:$0xff] %v1147_v43  ;;  %v1158_v47 = vadd.f32 %v2144_v45, %v2754_v31  ;;  %1752 = vst [vmem:[%s2758_s27 + $0x580] sm:$0xff] %v1531_v44  ;;  %v1542_v48 = vadd.f32 %v2240_v46, %v2754_v31 }
 0x192   : > { %v1149_v49 = vpop.f32.mrf.mxu0  ;;  %v1533_v50 = vpop.f32.mrf.mxu1 }
 0x193   : > { %1659 = vst [vmem:[%s2758_s27 + $0x298] sm:$0xff] %v1158_v47  ;;  %v1150_v51 = vadd.f32 %v2754_v31, %v1149_v49  ;;  %1755 = vst [vmem:[%s2758_s27 + $0x598] sm:$0xff] %v1542_v48  ;;  %v1534_v52 = vadd.f32 %v2754_v31, %v1533_v50 }
 0x194   : > { %v2147_v53 = vpop.f32.mrf.mxu0  ;;  %v2243_v54 = vpop.f32.mrf.mxu1 }
 0x195   : > { %1657 = vst [vmem:[%s2758_s27 + $0x288] sm:$0xff] %v1150_v51  ;;  %v1171_v55 = vadd.f32 %v2147_v53, %v2754_v31  ;;  %1753 = vst [vmem:[%s2758_s27 + $0x588] sm:$0xff] %v1534_v52  ;;  %v1555_v56 = vadd.f32 %v2243_v54, %v2754_v31 }
 0x196   : > { %v1162_v57 = vpop.f32.mrf.mxu0  ;;  %v1546_v58 = vpop.f32.mrf.mxu1 }
 0x197   : > { %1662 = vst [vmem:[%s2758_s27 + $0x2b0] sm:$0xff] %v1171_v55  ;;  %v1163_v60 = vadd.f32 %v2309_v59, %v1162_v57  ;;  %1758 = vst [vmem:[%s2758_s27 + $0x5b0] sm:$0xff] %v1555_v56  ;;  %v1547_v61 = vadd.f32 %v2309_v59, %v1546_v58 }
 0x198   : > { %v2148_v62 = vpop.f32.mrf.mxu0  ;;  %v2244_v63 = vpop.f32.mrf.mxu1 }
 0x199   : > { %1660 = vst [vmem:[%s2758_s27 + $0x2a0] sm:$0xff] %v1163_v60  ;;  %v1174_v0 = vadd.f32 %v2309_v59, %v2148_v62  ;;  %1756 = vst [vmem:[%s2758_s27 + $0x5a0] sm:$0xff] %v1547_v61  ;;  %v1558_v31 = vadd.f32 %v2309_v59, %v2244_v63 }
 0x19a   : > { %v1165_v1 = vpop.f32.mrf.mxu0  ;;  %v1549_v2 = vpop.f32.mrf.mxu1 }
 0x19b   : > { %1663 = vst [vmem:[%s2758_s27 + $0x2b8] sm:$0xff] %v1174_v0  ;;  %v1166_v3 = vadd.f32 %v2309_v59, %v1165_v1  ;;  %1759 = vst [vmem:[%s2758_s27 + $0x5b8] sm:$0xff] %v1558_v31  ;;  %v1550_v4 = vadd.f32 %v2309_v59, %v1549_v2 }
 0x19c   : > { %v2151_v5 = vpop.f32.mrf.mxu0  ;;  %v2247_v6 = vpop.f32.mrf.mxu1 }
 0x19d   : > { %1661 = vst [vmem:[%s2758_s27 + $0x2a8] sm:$0xff] %v1166_v3  ;;  %v1187_v7 = vadd.f32 %v2309_v59, %v2151_v5  ;;  %1757 = vst [vmem:[%s2758_s27 + $0x5a8] sm:$0xff] %v1550_v4  ;;  %v1571_v8 = vadd.f32 %v2309_v59, %v2247_v6 }
 0x19e   : > { %v1178_v9 = vpop.f32.mrf.mxu0  ;;  %v1562_v10 = vpop.f32.mrf.mxu1 }
 0x19f   : > { %1666 = vst [vmem:[%s2758_s27 + $0x2d0] sm:$0xff] %v1187_v7  ;;  %v1179_v11 = vadd.f32 %v2309_v59, %v1178_v9  ;;  %1762 = vst [vmem:[%s2758_s27 + $0x5d0] sm:$0xff] %v1571_v8  ;;  %v1563_v12 = vadd.f32 %v2309_v59, %v1562_v10 }
 0x1a0   : > { %v2152_v13 = vpop.f32.mrf.mxu0  ;;  %v2248_v14 = vpop.f32.mrf.mxu1 }
 0x1a1   : > { %1664 = vst [vmem:[%s2758_s27 + $0x2c0] sm:$0xff] %v1179_v11  ;;  %v1190_v15 = vadd.f32 %v2309_v59, %v2152_v13  ;;  %1760 = vst [vmem:[%s2758_s27 + $0x5c0] sm:$0xff] %v1563_v12 }
 0x1a2   : > { %v1181_v16 = vpop.f32.mrf.mxu0  ;;  %v1565_v17 = vpop.f32.mrf.mxu1 }
 0x1a3   : > { %1667 = vst [vmem:[%s2758_s27 + $0x2d8] sm:$0xff] %v1190_v15  ;;  %v1182_v18 = vadd.f32 %v2309_v59, %v1181_v16  ;;  %v1566_v19 = vadd.f32 %v2309_v59, %v1565_v17 }
 0x1a4   : > { %v2155_v20 = vpop.f32.mrf.mxu0 }
 0x1a5   : > { %1665 = vst [vmem:[%s2758_s27 + $0x2c8] sm:$0xff] %v1182_v18  ;;  %v1203_v21 = vadd.f32 %v2309_v59, %v2155_v20  ;;  %1761 = vst [vmem:[%s2758_s27 + $0x5c8] sm:$0xff] %v1566_v19 }
 0x1a6   : > { %v1194_v22 = vpop.f32.mrf.mxu0 }
 0x1a7   : > { %1670 = vst [vmem:[%s2758_s27 + $0x2f0] sm:$0xff] %v1203_v21  ;;  %v1195_v23 = vadd.f32 %v2309_v59, %v1194_v22 }
 0x1a8   : > { %v2156_v24 = vpop.f32.mrf.mxu0 }
 0x1a9   : > { %1668 = vst [vmem:[%s2758_s27 + $0x2e0] sm:$0xff] %v1195_v23  ;;  %v1206_v25 = vadd.f32 %v2309_v59, %v2156_v24 }
 0x1aa   : > { %v1197_v26 = vpop.f32.mrf.mxu0 }
 0x1ab   : > { %1671 = vst [vmem:[%s2758_s27 + $0x2f8] sm:$0xff] %v1206_v25  ;;  %v1198_v27 = vadd.f32 %v2309_v59, %v1197_v26 }
 0x1ad   : > { %1669 = vst [vmem:[%s2758_s27 + $0x2e8] sm:$0xff] %v1198_v27 }
 0x1ae   : > { %2323 = shalt.err (!%p2320_p3)
}
 0x1af   : > { %s2324_s17 = scalar_lea.hbm %s3121_s7, 23936  ;;  %s2328_s24 = scalar_lea.hbm %s3172_s3, 47872 }
 0x1b0   : > { %p2325_p4 = scmp.ne.s32.totalorder %s3121_s7, %s2324_s17  ;;  %p2329_p9 = scmp.lt.s32.totalorder %s3121_s7, %s3172_s3 }
 0x1b1   : > { %p2330_p10 = scmp.lt.s32.totalorder %s2328_s24, %s2324_s17 }
 0x1b2   : > { %p2326_p7 = pnand %p2325_p4, %p2433_p5 }
 0x1b3   : > { %p2331_p11 = por %p2330_p10, %p2329_p9 }
 0x1b4   : > { %p2327_p8 = pneg %p2326_p7 }
 0x1b6   : > { %p2332_p12 = pnand %p2331_p11, %p2327_p8 }
 0x1b8   : > { %2335 = shalt.err (!%p2332_p12)
}
 0x1b9   : > { %s2373_s27 = smov 128   ;;  %s2374_s28 = smov 8  }
 0x1ba   : > { %2262 = dma.vmem_to_hbm [thread:$0]  (%p2433_p5), %s3123_s4, 23936, %s3121_s7, %s3129_s16, %s2373_s27, %s2373_s27, %s2374_s28  }
 0x1bb PF: > { %p2268_p13 = scmp.ge.s32.totalorder %s2370_s15, 2  ;;  %s1792_s29 = sand.u32 1, %s2358_s12  }
 0x1bc   : > { %s1793_s30 = scalar_lea.sflag [#allocation3], %s1792_s29 }
 0x1bd   : > { %p2265_p0 = pnand %p2268_p13, %p2437_p6 }
 0x1bf   : > { %p2266_p1 = pneg %p2265_p0 }
 0x1c1   : > { %2353 = dma.done.wait (%p2266_p1), %s1793_s30, 23936  }
 0x1c2   : > { %2355 = vsyncadd (%p2266_p1), %s1793_s30, 4294943360  ;;  %p13_p2 = scmp.ge.s32.totalorder %s2420_s18, 4   ;;  %s3175_s12 = smov %s2362_s13 }
 0x1c3   : > { %s3176_s13 = smov %s2366_s14  ;;  %s3177_s14 = smov %s2431_s21 }
 0x1c4   : > { %s3178_s15 = smov %s2420_s18  ;;  %15 = sbr.rel (!%p13_p2) target bundleno = 3 (0x3), region = 67 }
 0x1c9   :  { %1798 = vsyncpa [#allocation3], 1 }
 0x1ca   :  { %1800 = vsyncpa [#allocation3 + $0x1], 1 }

</bundles_post_ra>
